<compile_context>
chip_gen: v5e
topology: v5e:2x2
jax: 0.10.0
libtpu: 0.0.40
codegen_flags: <defaults>
</compile_context>

<pallas_src>
import functools

import numpy as np
import jax
import jax.numpy as jnp
from jax.experimental import pallas as pl
from jax.experimental.pallas import tpu as pltpu


_SQRT2_INV = float(1.0 / np.sqrt(2.0))
_EPS = 1e-6

# MXU-native operand dtype (review: bf16 on v5e/v6e/v7x). Accumulation is f32.
_DOT_DTYPE = jnp.bfloat16


def _mm(a, b):
    """MXU matmul: bf16 operands, f32 accumulation."""
    return jnp.dot(a.astype(_DOT_DTYPE), b.astype(_DOT_DTYPE),
                   preferred_element_type=jnp.float32)


# ----------------------------------------------------------------------------
# In-kernel math helpers (f32 elementwise; exp/rsqrt go to the EUP slot).
# ----------------------------------------------------------------------------
def _erf(x):
    # Abramowitz & Stegun 7.1.26, ~1.5e-7 abs err: matches torch's exact-erf GELU
    # to f32 tolerance.  Kept exact (instead of tanh-approx) for semantics; after
    # fusion these GELUs act on tiny slabs so the extra VALU cost is negligible.
    a1, a2, a3, a4, a5 = (0.254829592, -0.284496736, 1.421413741,
                          -1.453152027, 1.061405429)
    p = 0.3275911
    sgn = jnp.where(x >= 0.0, 1.0, -1.0)
    z = jnp.abs(x)
    t = 1.0 / (1.0 + p * z)
    poly = ((((a5 * t + a4) * t + a3) * t + a2) * t + a1) * t
    return sgn * (1.0 - poly * jnp.exp(-z * z))


def _gelu_exact(x):
    return 0.5 * x * (1.0 + _erf(x * _SQRT2_INV))


def _layer_norm_rows(x, w, b):
    """PyTorch channels-first LayerNorm on a (C, L) slab: normalize over rows
    (channels) per column (pixel), biased variance, affine scale/shift."""
    u = jnp.mean(x, axis=0, keepdims=True)
    xc = x - u
    s = jnp.mean(xc * xc, axis=0, keepdims=True)
    return xc * jax.lax.rsqrt(s + _EPS) * w + b


# ----------------------------------------------------------------------------
# Bilinear (align_corners=True) resize expressed as a constant matrix.
# ----------------------------------------------------------------------------
def _interp_matrix(s_out, s_in):
    if s_out == 1:
        src = np.zeros((1,), dtype=np.float64)
    else:
        src = np.arange(s_out, dtype=np.float64) * (s_in - 1) / (s_out - 1)
    i0 = np.clip(np.floor(src).astype(np.int64), 0, s_in - 1)
    i1 = np.clip(i0 + 1, 0, s_in - 1)
    frac = src - i0
    A = np.zeros((s_out, s_in), dtype=np.float64)
    A[np.arange(s_out), i0] += 1.0 - frac
    A[np.arange(s_out), i1] += frac
    return A.astype(np.float32)


# ----------------------------------------------------------------------------
# Kernel 1: norm1 + Gobal (downsample, 3x permuted 1x1 conv, upsample, gate)
# ----------------------------------------------------------------------------
def _gobal_pallas(x2, ln1w, ln1b, Dt, Ut, w1, b1c, w2k, b2r, w3k, b3r, *, C, HW):
    N = x2.shape[0]
    C2 = C * C

    def kernel(x_ref, lw_ref, lb_ref, dt_ref, ut_ref,
               w1_ref, b1_ref, w2_ref, b2_ref, w3_ref, b3_ref, o_ref):
        xb = x_ref[0, :, :]                                    # (C, HW) f32
        y1 = _layer_norm_rows(xb, lw_ref[...], lb_ref[...])    # norm1 fused
        # bilinear (H,W)->(C,C) downsample as one matmul: cols = (b,c)
        d = _mm(y1, dt_ref[...])                               # (C, C^2)
        # conv1 over channels + GELU
        z1 = _gelu_exact(_mm(w1_ref[...], d) + b1_ref[...])    # (C_o, (b,c))
        # conv2 over the permuted axis via kron(W2^T, I) + GELU
        z2 = _gelu_exact(_mm(z1, w2_ref[...]) + b2_ref[...])   # (C_o, (p,c))
        # conv3 over the next permuted axis via kron(I, W3^T) + Sigmoid
        z3 = jax.nn.sigmoid(_mm(z2, w3_ref[...]) + b3_ref[...])  # (C_o, (p,q))
        # bilinear (C,C)->(H,W) upsample as one lane-dense matmul
        up = _mm(z3, ut_ref[...])                              # (C, HW)
        # gating multiply with the norm1 output (Gobal's `x * y`)
        o_ref[0, :, :] = (y1 * up).astype(o_ref.dtype)

    def full2(shape):
        return pl.BlockSpec(shape, lambda n: (0, 0))

    return pl.pallas_call(
        kernel,
        out_shape=jax.ShapeDtypeStruct((N, C, HW), jnp.float32),
        grid=(N,),
        in_specs=[
            pl.BlockSpec((1, C, HW), lambda n: (n, 0, 0)),     # x (NCHW flat)
            full2((C, 1)), full2((C, 1)),                      # ln1 w/b
            full2((HW, C2)), full2((C2, HW)),                  # Dt, Ut
            full2((C, C)), full2((C, 1)),                      # conv1 w/b
            full2((C2, C2)), full2((1, C2)),                   # conv2 kron w/b
            full2((C2, C2)), full2((1, C2)),                   # conv3 kron w/b
        ],
        out_specs=pl.BlockSpec((1, C, HW), lambda n: (n, 0, 0)),
        compiler_params=pltpu.CompilerParams(
            dimension_semantics=("parallel",),
            vmem_limit_bytes=32 * 1024 * 1024),
    )(x2, ln1w, ln1b, Dt, Ut, w1, b1c, w2k, b2r, w3k, b3r)


# ----------------------------------------------------------------------------
# Kernel 2: norm2 + 3x3 conv (halo taps, no im2col) + GELU + 1x1 conv + residual
# ----------------------------------------------------------------------------
def _fc_pallas(gp, ln2w, ln2b, vmask, emask, w1m, b1c, w2m, b2c, *, C, H, W, hidden):
    N = gp.shape[0]
    HW = H * W
    P = (H + 2) * W + 2        # H-padded, flat, +1 halo element on each side

    def kernel(gp_ref, lw_ref, lb_ref, vm_ref, em_ref,
               w1_ref, b1_ref, w2_ref, b2_ref, o_ref):
        gpv = gp_ref[0, :, :]                                    # (C, P) f32
        # norm2 fused; zero the halo columns (LN of zero padding would be the bias)
        ln = _layer_norm_rows(gpv, lw_ref[...], lb_ref[...]) * vm_ref[...]
        em = em_ref[...]                                         # (2, HW) edge masks
        # 9 shifted taps of the padded slab; W-boundary wraps are masked out.
        taps = []
        for kh in range(3):
            for kw in range(3):
                off = kh * W + kw
                t = ln[:, off:off + HW]                          # (C, HW)
                if kw == 0:
                    t = t * em[0:1, :]
                elif kw == 2:
                    t = t * em[1:2, :]
                taps.append(t)
        stacked = jnp.concatenate(taps, axis=0)                  # (9C, HW)
        h = _gelu_exact(_mm(w1_ref[...], stacked) + b1_ref[...])  # (hidden, HW)
        out = _mm(w2_ref[...], h) + b2_ref[...]                  # (C, HW)
        res = gpv[:, W + 1:W + 1 + HW]                           # original g (residual)
        o_ref[0, :, :] = (out + res).astype(o_ref.dtype)

    def full2(shape):
        return pl.BlockSpec(shape, lambda n: (0, 0))

    return pl.pallas_call(
        kernel,
        out_shape=jax.ShapeDtypeStruct((N, C, HW), jnp.float32),
        grid=(N,),
        in_specs=[
            pl.BlockSpec((1, C, P), lambda n: (n, 0, 0)),        # padded g
            full2((C, 1)), full2((C, 1)),                        # ln2 w/b
            full2((1, P)), full2((2, HW)),                       # valid / edge masks
            full2((hidden, 9 * C)), full2((hidden, 1)),          # conv3x3 w/b
            full2((C, hidden)), full2((C, 1)),                   # conv1x1 w/b
        ],
        out_specs=pl.BlockSpec((1, C, HW), lambda n: (n, 0, 0)),
        compiler_params=pltpu.CompilerParams(
            dimension_semantics=("parallel",),
            vmem_limit_bytes=32 * 1024 * 1024),
    )(gp, ln2w, ln2b, vmask, emask, w1m, b1c, w2m, b2c)


# ----------------------------------------------------------------------------
# Parameters (deterministic synthetic init; shapes from the module __init__)
# ----------------------------------------------------------------------------
def init_params(key, dim, ffn_scale=2.0):
    hidden = int(dim * ffn_scale)
    keys = jax.random.split(key, 10)
    p = {}
    p["ln1_w"] = jnp.ones((dim,), jnp.float32)
    p["ln1_b"] = jnp.zeros((dim,), jnp.float32)
    p["ln2_w"] = jnp.ones((dim,), jnp.float32)
    p["ln2_b"] = jnp.zeros((dim,), jnp.float32)
    # Gobal: three 1x1 convs, PyTorch weight layout (out, in)
    p["g_w1"] = 0.2 * jax.random.normal(keys[0], (dim, dim), jnp.float32)
    p["g_b1"] = 0.1 * jax.random.normal(keys[1], (dim,), jnp.float32)
    p["g_w2"] = 0.2 * jax.random.normal(keys[2], (dim, dim), jnp.float32)
    p["g_b2"] = 0.1 * jax.random.normal(keys[3], (dim,), jnp.float32)
    p["g_w3"] = 0.2 * jax.random.normal(keys[4], (dim, dim), jnp.float32)
    p["g_b3"] = 0.1 * jax.random.normal(keys[5], (dim,), jnp.float32)
    # FC: Conv2d(dim, hidden, 3, 1, 1) -> GELU -> Conv2d(hidden, dim, 1, 1, 0)
    p["fc_w1"] = 0.1 * jax.random.normal(keys[6], (hidden, dim, 3, 3), jnp.float32)
    p["fc_b1"] = 0.1 * jax.random.normal(keys[7], (hidden,), jnp.float32)
    p["fc_w2"] = 0.1 * jax.random.normal(keys[8], (dim, hidden), jnp.float32)
    p["fc_b2"] = 0.1 * jax.random.normal(keys[9], (dim,), jnp.float32)
    return p


# ----------------------------------------------------------------------------
# Forward pass (AttBlock.forward)
# ----------------------------------------------------------------------------
def att_block_forward(x_nchw, params):
    N, C, H, W = x_nchw.shape
    HW = H * W
    hidden = params["fc_w1"].shape[0]
    f32 = jnp.float32

    x2 = x_nchw.reshape(N, C, HW).astype(f32)     # NCHW-native flat slabs

    # ---- trace-time constants: bilinear matrices & Kronecker-expanded weights --
    Bh = _interp_matrix(C, H)                      # height H -> C
    Bw = _interp_matrix(C, W)                      # width  W -> C
    Ah = _interp_matrix(H, C)                      # height C -> H
    Aw = _interp_matrix(W, C)                      # width  C -> W
    Dt = jnp.asarray(np.kron(Bh, Bw).T, dtype=_DOT_DTYPE)   # (HW, C^2)
    Ut = jnp.asarray(np.kron(Ah, Aw).T, dtype=_DOT_DTYPE)   # (C^2, HW)

    eyeC = jnp.eye(C, dtype=f32)
    g_w1 = params["g_w1"].astype(_DOT_DTYPE)                          # (C, C)
    g_b1 = params["g_b1"].reshape(C, 1).astype(f32)
    w2k = jnp.kron(params["g_w2"].T.astype(f32), eyeC).astype(_DOT_DTYPE)   # (C^2, C^2)
    b2r = jnp.repeat(params["g_b2"].astype(f32), C).reshape(1, C * C)
    w3k = jnp.kron(eyeC, params["g_w3"].T.astype(f32)).astype(_DOT_DTYPE)   # (C^2, C^2)
    b3r = jnp.tile(params["g_b3"].astype(f32), C).reshape(1, C * C)
    ln1w = params["ln1_w"].reshape(C, 1).astype(f32)
    ln1b = params["ln1_b"].reshape(C, 1).astype(f32)

    # ---- fused norm1 + Gobal kernel ----
    g = _gobal_pallas(x2, ln1w, ln1b, Dt, Ut, g_w1, g_b1, w2k, b2r, w3k, b3r,
                      C=C, HW=HW)                                      # (N, C, HW)

    # ---- glue: H-halo pad for the in-kernel 3x3 conv (one small XLA pad) ----
    gp = jnp.pad(g.reshape(N, C, H, W), ((0, 0), (0, 0), (1, 1), (0, 0)))
    gp = jnp.pad(gp.reshape(N, C, (H + 2) * W), ((0, 0), (0, 0), (1, 1)))
    P = (H + 2) * W + 2

    vmask = np.zeros((1, P), np.float32)
    vmask[0, W + 1:(H + 1) * W + 1] = 1.0                    # real-pixel columns
    wpos = np.arange(HW) % W
    emask = np.stack([(wpos != 0), (wpos != W - 1)]).astype(np.float32)  # (2, HW)

    ln2w = params["ln2_w"].reshape(C, 1).astype(f32)
    ln2b = params["ln2_b"].reshape(C, 1).astype(f32)
    # (hidden, dim, 3, 3) -> (hidden, 9*dim) matching the [tap-major, chan-minor] taps
    w1m = jnp.transpose(params["fc_w1"], (0, 2, 3, 1)).reshape(hidden, 9 * C)
    w1m = w1m.astype(_DOT_DTYPE)
    b1fc = params["fc_b1"].reshape(hidden, 1).astype(f32)
    w2m = params["fc_w2"].astype(_DOT_DTYPE)                 # (dim, hidden)
    b2fc = params["fc_b2"].reshape(C, 1).astype(f32)

    # ---- fused norm2 + 3x3 conv + GELU + 1x1 conv + residual kernel ----
    out = _fc_pallas(gp, ln2w, ln2b, jnp.asarray(vmask), jnp.asarray(emask),
                     w1m, b1fc, w2m, b2fc, C=C, H=H, W=W, hidden=hidden)

    return out.reshape(N, C, H, W).astype(x_nchw.dtype)


if __name__ == "__main__":
    key = jax.random.PRNGKey(0)
    kx, kp = jax.random.split(key)
    N, dim, H, W = 2, 8, 16, 16
    x = jax.random.normal(kx, (N, dim, H, W), jnp.float32)
    params = init_params(kp, dim, ffn_scale=2.0)

    fwd = jax.jit(functools.partial(att_block_forward, params=params))
    out = jax.block_until_ready(fwd(x))

    assert out.shape == (N, dim, H, W), out.shape
    assert bool(jnp.all(jnp.isfinite(out)))
    print("KERNEL_OK")
</pallas_src>

<mosaic_0001>
module attributes {stable_mosaic.version = 11 : i64} {
  func.func @kernel(%arg0: i32, %arg1: memref<1x8x256xf32, #tpu.memory_space<vmem>>, %arg2: memref<8x1xf32, #tpu.memory_space<vmem>>, %arg3: memref<8x1xf32, #tpu.memory_space<vmem>>, %arg4: memref<256x64xbf16, #tpu.memory_space<vmem>>, %arg5: memref<64x256xbf16, #tpu.memory_space<vmem>>, %arg6: memref<8x8xbf16, #tpu.memory_space<vmem>>, %arg7: memref<8x1xf32, #tpu.memory_space<vmem>>, %arg8: memref<64x64xbf16, #tpu.memory_space<vmem>>, %arg9: memref<1x64xf32, #tpu.memory_space<vmem>>, %arg10: memref<64x64xbf16, #tpu.memory_space<vmem>>, %arg11: memref<1x64xf32, #tpu.memory_space<vmem>>, %arg12: memref<1x8x256xf32, #tpu.memory_space<vmem>>) attributes {dimension_semantics = [#tpu.dimension_semantics<parallel>], iteration_bounds = array<i64: 2>, scalar_prefetch = 0 : i64, scratch_operands = 0 : i64, tpu.core_type = #tpu.core_type<tc>, window_params = [{transform_indices = @transform_0, window_bounds = array<i64: 1, 8, 256>}, {pipeline_mode = #tpu.pipeline_mode<synchronous>, transform_indices = @transform_1, window_bounds = array<i64: 8, 1>}, {pipeline_mode = #tpu.pipeline_mode<synchronous>, transform_indices = @transform_2, window_bounds = array<i64: 8, 1>}, {pipeline_mode = #tpu.pipeline_mode<synchronous>, transform_indices = @transform_3, window_bounds = array<i64: 256, 64>}, {pipeline_mode = #tpu.pipeline_mode<synchronous>, transform_indices = @transform_4, window_bounds = array<i64: 64, 256>}, {pipeline_mode = #tpu.pipeline_mode<synchronous>, transform_indices = @transform_5, window_bounds = array<i64: 8, 8>}, {pipeline_mode = #tpu.pipeline_mode<synchronous>, transform_indices = @transform_6, window_bounds = array<i64: 8, 1>}, {pipeline_mode = #tpu.pipeline_mode<synchronous>, transform_indices = @transform_7, window_bounds = array<i64: 64, 64>}, {pipeline_mode = #tpu.pipeline_mode<synchronous>, transform_indices = @transform_8, window_bounds = array<i64: 1, 64>}, {pipeline_mode = #tpu.pipeline_mode<synchronous>, transform_indices = @transform_9, window_bounds = array<i64: 64, 64>}, {pipeline_mode = #tpu.pipeline_mode<synchronous>, transform_indices = @transform_10, window_bounds = array<i64: 1, 64>}, {transform_indices = @transform_11, window_bounds = array<i64: 1, 8, 256>}]} {
    %c0 = arith.constant 0 : index
    %c0_0 = arith.constant 0 : index
    %c0_1 = arith.constant 0 : index
    %0 = vector.load %arg1[%c0, %c0_0, %c0_1] : memref<1x8x256xf32, #tpu.memory_space<vmem>>, vector<1x8x256xf32>
    %1 = vector.shape_cast %0 : vector<1x8x256xf32> to vector<8x256xf32>
    %c0_2 = arith.constant 0 : index
    %c0_3 = arith.constant 0 : index
    %2 = vector.load %arg2[%c0_2, %c0_3] : memref<8x1xf32, #tpu.memory_space<vmem>>, vector<8x1xf32>
    %c0_4 = arith.constant 0 : index
    %c0_5 = arith.constant 0 : index
    %3 = vector.load %arg3[%c0_4, %c0_5] : memref<8x1xf32, #tpu.memory_space<vmem>>, vector<8x1xf32>
    %cst = arith.constant dense<0.000000e+00> : vector<256xf32>
    %4 = vector.multi_reduction <add>, %1, %cst [0] : vector<8x256xf32> to vector<256xf32>
    %5 = vector.shape_cast %4 : vector<256xf32> to vector<1x256xf32>
    %cst_6 = arith.constant 8.000000e+00 : f32
    %6 = vector.broadcast %cst_6 : f32 to vector<1x256xf32>
    %7 = arith.divf %5, %6 : vector<1x256xf32>
    %8 = vector.broadcast %7 : vector<1x256xf32> to vector<8x256xf32>
    %9 = arith.subf %1, %8 : vector<8x256xf32>
    %10 = arith.mulf %9, %9 : vector<8x256xf32>
    %cst_7 = arith.constant dense<0.000000e+00> : vector<256xf32>
    %11 = vector.multi_reduction <add>, %10, %cst_7 [0] : vector<8x256xf32> to vector<256xf32>
    %12 = vector.shape_cast %11 : vector<256xf32> to vector<1x256xf32>
    %cst_8 = arith.constant 8.000000e+00 : f32
    %13 = vector.broadcast %cst_8 : f32 to vector<1x256xf32>
    %14 = arith.divf %12, %13 : vector<1x256xf32>
    %cst_9 = arith.constant 9.99999997E-7 : f32
    %15 = vector.broadcast %cst_9 : f32 to vector<1x256xf32>
    %16 = arith.addf %14, %15 : vector<1x256xf32>
    %17 = math.rsqrt %16 : vector<1x256xf32>
    %18 = vector.broadcast %17 : vector<1x256xf32> to vector<8x256xf32>
    %19 = arith.mulf %9, %18 : vector<8x256xf32>
    %20 = vector.broadcast %2 : vector<8x1xf32> to vector<8x256xf32>
    %21 = arith.mulf %19, %20 : vector<8x256xf32>
    %22 = vector.broadcast %3 : vector<8x1xf32> to vector<8x256xf32>
    %23 = arith.addf %21, %22 : vector<8x256xf32>
    %c0_10 = arith.constant 0 : index
    %c0_11 = arith.constant 0 : index
    %24 = vector.load %arg4[%c0_10, %c0_11] : memref<256x64xbf16, #tpu.memory_space<vmem>>, vector<256x64xbf16>
    %25 = arith.truncf %23 : vector<8x256xf32> to vector<8x256xbf16>
    %cst_12 = arith.constant dense<0.000000e+00> : vector<8x64xf32>
    %26 = tpu.matmul %25, %24, %cst_12 {dimension_numbers = #tpu.dot_dimension_numbers<[1], [0], [0], [1], [0, 0, 1, 1], [], []>} : vector<8x256xbf16>, vector<256x64xbf16>, vector<8x64xf32> -> vector<8x64xf32>
    %c0_13 = arith.constant 0 : index
    %c0_14 = arith.constant 0 : index
    %27 = vector.load %arg6[%c0_13, %c0_14] : memref<8x8xbf16, #tpu.memory_space<vmem>>, vector<8x8xbf16>
    %28 = arith.truncf %26 : vector<8x64xf32> to vector<8x64xbf16>
    %cst_15 = arith.constant dense<0.000000e+00> : vector<8x64xf32>
    %29 = tpu.matmul %27, %28, %cst_15 {dimension_numbers = #tpu.dot_dimension_numbers<[1], [0], [0], [1], [0, 0, 1, 1], [], []>} : vector<8x8xbf16>, vector<8x64xbf16>, vector<8x64xf32> -> vector<8x64xf32>
    %c0_16 = arith.constant 0 : index
    %c0_17 = arith.constant 0 : index
    %30 = vector.load %arg7[%c0_16, %c0_17] : memref<8x1xf32, #tpu.memory_space<vmem>>, vector<8x1xf32>
    %31 = vector.broadcast %30 : vector<8x1xf32> to vector<8x64xf32>
    %32 = arith.addf %29, %31 : vector<8x64xf32>
    %cst_18 = arith.constant 5.000000e-01 : f32
    %33 = vector.broadcast %cst_18 : f32 to vector<8x64xf32>
    %34 = arith.mulf %33, %32 : vector<8x64xf32>
    %cst_19 = arith.constant 0.707106769 : f32
    %35 = vector.broadcast %cst_19 : f32 to vector<8x64xf32>
    %36 = arith.mulf %32, %35 : vector<8x64xf32>
    %cst_20 = arith.constant 0.000000e+00 : f32
    %37 = vector.broadcast %cst_20 : f32 to vector<8x64xf32>
    %38 = arith.cmpf oge, %36, %37 : vector<8x64xf32>
    %cst_21 = arith.constant 1.000000e+00 : f32
    %cst_22 = arith.constant -1.000000e+00 : f32
    %39 = vector.broadcast %cst_21 : f32 to vector<8x64xf32>
    %40 = vector.broadcast %cst_22 : f32 to vector<8x64xf32>
    %41 = arith.select %38, %39, %40 : vector<8x64xi1>, vector<8x64xf32>
    %42 = math.absf %36 : vector<8x64xf32>
    %cst_23 = arith.constant 0.327591091 : f32
    %43 = vector.broadcast %cst_23 : f32 to vector<8x64xf32>
    %44 = arith.mulf %43, %42 : vector<8x64xf32>
    %cst_24 = arith.constant 1.000000e+00 : f32
    %45 = vector.broadcast %cst_24 : f32 to vector<8x64xf32>
    %46 = arith.addf %45, %44 : vector<8x64xf32>
    %cst_25 = arith.constant 1.000000e+00 : f32
    %47 = vector.broadcast %cst_25 : f32 to vector<8x64xf32>
    %48 = arith.divf %47, %46 : vector<8x64xf32>
    %cst_26 = arith.constant 1.06140542 : f32
    %49 = vector.broadcast %cst_26 : f32 to vector<8x64xf32>
    %50 = arith.mulf %49, %48 : vector<8x64xf32>
    %cst_27 = arith.constant -1.45315206 : f32
    %51 = vector.broadcast %cst_27 : f32 to vector<8x64xf32>
    %52 = arith.addf %50, %51 : vector<8x64xf32>
    %53 = arith.mulf %52, %48 : vector<8x64xf32>
    %cst_28 = arith.constant 1.42141378 : f32
    %54 = vector.broadcast %cst_28 : f32 to vector<8x64xf32>
    %55 = arith.addf %53, %54 : vector<8x64xf32>
    %56 = arith.mulf %55, %48 : vector<8x64xf32>
    %cst_29 = arith.constant -0.284496725 : f32
    %57 = vector.broadcast %cst_29 : f32 to vector<8x64xf32>
    %58 = arith.addf %56, %57 : vector<8x64xf32>
    %59 = arith.mulf %58, %48 : vector<8x64xf32>
    %cst_30 = arith.constant 0.254829586 : f32
    %60 = vector.broadcast %cst_30 : f32 to vector<8x64xf32>
    %61 = arith.addf %59, %60 : vector<8x64xf32>
    %62 = arith.mulf %61, %48 : vector<8x64xf32>
    %cst_31 = arith.constant 0.000000e+00 : f32
    %63 = vector.broadcast %cst_31 : f32 to vector<8x64xf32>
    %64 = arith.subf %63, %42 : vector<8x64xf32>
    %65 = arith.mulf %64, %42 : vector<8x64xf32>
    %66 = math.exp %65 : vector<8x64xf32>
    %67 = arith.mulf %62, %66 : vector<8x64xf32>
    %cst_32 = arith.constant 1.000000e+00 : f32
    %68 = vector.broadcast %cst_32 : f32 to vector<8x64xf32>
    %69 = arith.subf %68, %67 : vector<8x64xf32>
    %70 = arith.mulf %41, %69 : vector<8x64xf32>
    %cst_33 = arith.constant 1.000000e+00 : f32
    %71 = vector.broadcast %cst_33 : f32 to vector<8x64xf32>
    %72 = arith.addf %71, %70 : vector<8x64xf32>
    %73 = arith.mulf %34, %72 : vector<8x64xf32>
    %c0_34 = arith.constant 0 : index
    %c0_35 = arith.constant 0 : index
    %74 = vector.load %arg8[%c0_34, %c0_35] : memref<64x64xbf16, #tpu.memory_space<vmem>>, vector<64x64xbf16>
    %75 = arith.truncf %73 : vector<8x64xf32> to vector<8x64xbf16>
    %cst_36 = arith.constant dense<0.000000e+00> : vector<8x64xf32>
    %76 = tpu.matmul %75, %74, %cst_36 {dimension_numbers = #tpu.dot_dimension_numbers<[1], [0], [0], [1], [0, 0, 1, 1], [], []>} : vector<8x64xbf16>, vector<64x64xbf16>, vector<8x64xf32> -> vector<8x64xf32>
    %c0_37 = arith.constant 0 : index
    %c0_38 = arith.constant 0 : index
    %77 = vector.load %arg9[%c0_37, %c0_38] : memref<1x64xf32, #tpu.memory_space<vmem>>, vector<1x64xf32>
    %78 = vector.broadcast %77 : vector<1x64xf32> to vector<8x64xf32>
    %79 = arith.addf %76, %78 : vector<8x64xf32>
    %cst_39 = arith.constant 5.000000e-01 : f32
    %80 = vector.broadcast %cst_39 : f32 to vector<8x64xf32>
    %81 = arith.mulf %80, %79 : vector<8x64xf32>
    %cst_40 = arith.constant 0.707106769 : f32
    %82 = vector.broadcast %cst_40 : f32 to vector<8x64xf32>
    %83 = arith.mulf %79, %82 : vector<8x64xf32>
    %cst_41 = arith.constant 0.000000e+00 : f32
    %84 = vector.broadcast %cst_41 : f32 to vector<8x64xf32>
    %85 = arith.cmpf oge, %83, %84 : vector<8x64xf32>
    %cst_42 = arith.constant 1.000000e+00 : f32
    %cst_43 = arith.constant -1.000000e+00 : f32
    %86 = vector.broadcast %cst_42 : f32 to vector<8x64xf32>
    %87 = vector.broadcast %cst_43 : f32 to vector<8x64xf32>
    %88 = arith.select %85, %86, %87 : vector<8x64xi1>, vector<8x64xf32>
    %89 = math.absf %83 : vector<8x64xf32>
    %cst_44 = arith.constant 0.327591091 : f32
    %90 = vector.broadcast %cst_44 : f32 to vector<8x64xf32>
    %91 = arith.mulf %90, %89 : vector<8x64xf32>
    %cst_45 = arith.constant 1.000000e+00 : f32
    %92 = vector.broadcast %cst_45 : f32 to vector<8x64xf32>
    %93 = arith.addf %92, %91 : vector<8x64xf32>
    %cst_46 = arith.constant 1.000000e+00 : f32
    %94 = vector.broadcast %cst_46 : f32 to vector<8x64xf32>
    %95 = arith.divf %94, %93 : vector<8x64xf32>
    %cst_47 = arith.constant 1.06140542 : f32
    %96 = vector.broadcast %cst_47 : f32 to vector<8x64xf32>
    %97 = arith.mulf %96, %95 : vector<8x64xf32>
    %cst_48 = arith.constant -1.45315206 : f32
    %98 = vector.broadcast %cst_48 : f32 to vector<8x64xf32>
    %99 = arith.addf %97, %98 : vector<8x64xf32>
    %100 = arith.mulf %99, %95 : vector<8x64xf32>
    %cst_49 = arith.constant 1.42141378 : f32
    %101 = vector.broadcast %cst_49 : f32 to vector<8x64xf32>
    %102 = arith.addf %100, %101 : vector<8x64xf32>
    %103 = arith.mulf %102, %95 : vector<8x64xf32>
    %cst_50 = arith.constant -0.284496725 : f32
    %104 = vector.broadcast %cst_50 : f32 to vector<8x64xf32>
    %105 = arith.addf %103, %104 : vector<8x64xf32>
    %106 = arith.mulf %105, %95 : vector<8x64xf32>
    %cst_51 = arith.constant 0.254829586 : f32
    %107 = vector.broadcast %cst_51 : f32 to vector<8x64xf32>
    %108 = arith.addf %106, %107 : vector<8x64xf32>
    %109 = arith.mulf %108, %95 : vector<8x64xf32>
    %cst_52 = arith.constant 0.000000e+00 : f32
    %110 = vector.broadcast %cst_52 : f32 to vector<8x64xf32>
    %111 = arith.subf %110, %89 : vector<8x64xf32>
    %112 = arith.mulf %111, %89 : vector<8x64xf32>
    %113 = math.exp %112 : vector<8x64xf32>
    %114 = arith.mulf %109, %113 : vector<8x64xf32>
    %cst_53 = arith.constant 1.000000e+00 : f32
    %115 = vector.broadcast %cst_53 : f32 to vector<8x64xf32>
    %116 = arith.subf %115, %114 : vector<8x64xf32>
    %117 = arith.mulf %88, %116 : vector<8x64xf32>
    %cst_54 = arith.constant 1.000000e+00 : f32
    %118 = vector.broadcast %cst_54 : f32 to vector<8x64xf32>
    %119 = arith.addf %118, %117 : vector<8x64xf32>
    %120 = arith.mulf %81, %119 : vector<8x64xf32>
    %c0_55 = arith.constant 0 : index
    %c0_56 = arith.constant 0 : index
    %121 = vector.load %arg10[%c0_55, %c0_56] : memref<64x64xbf16, #tpu.memory_space<vmem>>, vector<64x64xbf16>
    %122 = arith.truncf %120 : vector<8x64xf32> to vector<8x64xbf16>
    %cst_57 = arith.constant dense<0.000000e+00> : vector<8x64xf32>
    %123 = tpu.matmul %122, %121, %cst_57 {dimension_numbers = #tpu.dot_dimension_numbers<[1], [0], [0], [1], [0, 0, 1, 1], [], []>} : vector<8x64xbf16>, vector<64x64xbf16>, vector<8x64xf32> -> vector<8x64xf32>
    %c0_58 = arith.constant 0 : index
    %c0_59 = arith.constant 0 : index
    %124 = vector.load %arg11[%c0_58, %c0_59] : memref<1x64xf32, #tpu.memory_space<vmem>>, vector<1x64xf32>
    %125 = vector.broadcast %124 : vector<1x64xf32> to vector<8x64xf32>
    %126 = arith.addf %123, %125 : vector<8x64xf32>
    %127 = arith.negf %126 : vector<8x64xf32>
    %128 = math.exp %127 : vector<8x64xf32>
    %cst_60 = arith.constant 1.000000e+00 : f32
    %129 = vector.broadcast %cst_60 : f32 to vector<8x64xf32>
    %130 = arith.addf %129, %128 : vector<8x64xf32>
    %131 = arith.divf %129, %130 : vector<8x64xf32>
    %c0_61 = arith.constant 0 : index
    %c0_62 = arith.constant 0 : index
    %132 = vector.load %arg5[%c0_61, %c0_62] : memref<64x256xbf16, #tpu.memory_space<vmem>>, vector<64x256xbf16>
    %133 = arith.truncf %131 : vector<8x64xf32> to vector<8x64xbf16>
    %cst_63 = arith.constant dense<0.000000e+00> : vector<8x256xf32>
    %134 = tpu.matmul %133, %132, %cst_63 {dimension_numbers = #tpu.dot_dimension_numbers<[1], [0], [0], [1], [0, 0, 1, 1], [], []>} : vector<8x64xbf16>, vector<64x256xbf16>, vector<8x256xf32> -> vector<8x256xf32>
    %135 = arith.mulf %23, %134 : vector<8x256xf32>
    %c0_64 = arith.constant 0 : index
    %c0_65 = arith.constant 0 : index
    %c0_66 = arith.constant 0 : index
    %136 = vector.load %arg12[%c0_64, %c0_65, %c0_66] : memref<1x8x256xf32, #tpu.memory_space<vmem>>, vector<1x8x256xf32>
    %137 = vector.shape_cast %136 : vector<1x8x256xf32> to vector<8x256xf32>
    %138 = vector.shape_cast %135 : vector<8x256xf32> to vector<1x8x256xf32>
    tpu.vector_store %arg12[%c0_64, %c0_65, %c0_66], %138 {strides = array<i32>} : memref<1x8x256xf32, #tpu.memory_space<vmem>>, vector<1x8x256xf32>,
    return
  }
  func.func @transform_0(%arg0: i32) -> (i32, i32, i32) {
    %c0_i32 = arith.constant 0 : i32
    %c0_i32_0 = arith.constant 0 : i32
    %c0_i32_1 = arith.constant 0 : i32
    return %arg0, %c0_i32, %c0_i32_0 : i32, i32, i32
  }
  func.func @transform_1(%arg0: i32) -> (i32, i32) {
    %c0_i32 = arith.constant 0 : i32
    %c0_i32_0 = arith.constant 0 : i32
    %c0_i32_1 = arith.constant 0 : i32
    return %c0_i32, %c0_i32_0 : i32, i32
  }
  func.func @transform_2(%arg0: i32) -> (i32, i32) {
    %c0_i32 = arith.constant 0 : i32
    %c0_i32_0 = arith.constant 0 : i32
    %c0_i32_1 = arith.constant 0 : i32
    return %c0_i32, %c0_i32_0 : i32, i32
  }
  func.func @transform_3(%arg0: i32) -> (i32, i32) {
    %c0_i32 = arith.constant 0 : i32
    %c0_i32_0 = arith.constant 0 : i32
    %c0_i32_1 = arith.constant 0 : i32
    return %c0_i32, %c0_i32_0 : i32, i32
  }
  func.func @transform_4(%arg0: i32) -> (i32, i32) {
    %c0_i32 = arith.constant 0 : i32
    %c0_i32_0 = arith.constant 0 : i32
    %c0_i32_1 = arith.constant 0 : i32
    return %c0_i32, %c0_i32_0 : i32, i32
  }
  func.func @transform_5(%arg0: i32) -> (i32, i32) {
    %c0_i32 = arith.constant 0 : i32
    %c0_i32_0 = arith.constant 0 : i32
    %c0_i32_1 = arith.constant 0 : i32
    return %c0_i32, %c0_i32_0 : i32, i32
  }
  func.func @transform_6(%arg0: i32) -> (i32, i32) {
    %c0_i32 = arith.constant 0 : i32
    %c0_i32_0 = arith.constant 0 : i32
    %c0_i32_1 = arith.constant 0 : i32
    return %c0_i32, %c0_i32_0 : i32, i32
  }
  func.func @transform_7(%arg0: i32) -> (i32, i32) {
    %c0_i32 = arith.constant 0 : i32
    %c0_i32_0 = arith.constant 0 : i32
    %c0_i32_1 = arith.constant 0 : i32
    return %c0_i32, %c0_i32_0 : i32, i32
  }
  func.func @transform_8(%arg0: i32) -> (i32, i32) {
    %c0_i32 = arith.constant 0 : i32
    %c0_i32_0 = arith.constant 0 : i32
    %c0_i32_1 = arith.constant 0 : i32
    return %c0_i32, %c0_i32_0 : i32, i32
  }
  func.func @transform_9(%arg0: i32) -> (i32, i32) {
    %c0_i32 = arith.constant 0 : i32
    %c0_i32_0 = arith.constant 0 : i32
    %c0_i32_1 = arith.constant 0 : i32
    return %c0_i32, %c0_i32_0 : i32, i32
  }
  func.func @transform_10(%arg0: i32) -> (i32, i32) {
    %c0_i32 = arith.constant 0 : i32
    %c0_i32_0 = arith.constant 0 : i32
    %c0_i32_1 = arith.constant 0 : i32
    return %c0_i32, %c0_i32_0 : i32, i32
  }
  func.func @transform_11(%arg0: i32) -> (i32, i32, i32) {
    %c0_i32 = arith.constant 0 : i32
    %c0_i32_0 = arith.constant 0 : i32
    %c0_i32_1 = arith.constant 0 : i32
    return %arg0, %c0_i32, %c0_i32_0 : i32, i32, i32
  }
}

module attributes {stable_mosaic.version = 11 : i64} {
  func.func @kernel(%arg0: i32, %arg1: memref<1x8x290xf32, #tpu.memory_space<vmem>>, %arg2: memref<8x1xf32, #tpu.memory_space<vmem>>, %arg3: memref<8x1xf32, #tpu.memory_space<vmem>>, %arg4: memref<1x290xf32, #tpu.memory_space<vmem>>, %arg5: memref<2x256xf32, #tpu.memory_space<vmem>>, %arg6: memref<16x72xbf16, #tpu.memory_space<vmem>>, %arg7: memref<16x1xf32, #tpu.memory_space<vmem>>, %arg8: memref<8x16xbf16, #tpu.memory_space<vmem>>, %arg9: memref<8x1xf32, #tpu.memory_space<vmem>>, %arg10: memref<1x8x256xf32, #tpu.memory_space<vmem>>) attributes {dimension_semantics = [#tpu.dimension_semantics<parallel>], iteration_bounds = array<i64: 2>, scalar_prefetch = 0 : i64, scratch_operands = 0 : i64, tpu.core_type = #tpu.core_type<tc>, window_params = [{transform_indices = @transform_0, window_bounds = array<i64: 1, 8, 290>}, {pipeline_mode = #tpu.pipeline_mode<synchronous>, transform_indices = @transform_1, window_bounds = array<i64: 8, 1>}, {pipeline_mode = #tpu.pipeline_mode<synchronous>, transform_indices = @transform_2, window_bounds = array<i64: 8, 1>}, {pipeline_mode = #tpu.pipeline_mode<synchronous>, transform_indices = @transform_3, window_bounds = array<i64: 1, 290>}, {pipeline_mode = #tpu.pipeline_mode<synchronous>, transform_indices = @transform_4, window_bounds = array<i64: 2, 256>}, {pipeline_mode = #tpu.pipeline_mode<synchronous>, transform_indices = @transform_5, window_bounds = array<i64: 16, 72>}, {pipeline_mode = #tpu.pipeline_mode<synchronous>, transform_indices = @transform_6, window_bounds = array<i64: 16, 1>}, {pipeline_mode = #tpu.pipeline_mode<synchronous>, transform_indices = @transform_7, window_bounds = array<i64: 8, 16>}, {pipeline_mode = #tpu.pipeline_mode<synchronous>, transform_indices = @transform_8, window_bounds = array<i64: 8, 1>}, {transform_indices = @transform_9, window_bounds = array<i64: 1, 8, 256>}]} {
    %c0 = arith.constant 0 : index
    %c0_0 = arith.constant 0 : index
    %c0_1 = arith.constant 0 : index
    %0 = vector.load %arg1[%c0, %c0_0, %c0_1] : memref<1x8x290xf32, #tpu.memory_space<vmem>>, vector<1x8x290xf32>
    %1 = vector.shape_cast %0 : vector<1x8x290xf32> to vector<8x290xf32>
    %c0_2 = arith.constant 0 : index
    %c0_3 = arith.constant 0 : index
    %2 = vector.load %arg2[%c0_2, %c0_3] : memref<8x1xf32, #tpu.memory_space<vmem>>, vector<8x1xf32>
    %c0_4 = arith.constant 0 : index
    %c0_5 = arith.constant 0 : index
    %3 = vector.load %arg3[%c0_4, %c0_5] : memref<8x1xf32, #tpu.memory_space<vmem>>, vector<8x1xf32>
    %cst = arith.constant dense<0.000000e+00> : vector<290xf32>
    %4 = vector.multi_reduction <add>, %1, %cst [0] : vector<8x290xf32> to vector<290xf32>
    %5 = vector.shape_cast %4 : vector<290xf32> to vector<1x290xf32>
    %cst_6 = arith.constant 8.000000e+00 : f32
    %6 = vector.broadcast %cst_6 : f32 to vector<1x290xf32>
    %7 = arith.divf %5, %6 : vector<1x290xf32>
    %8 = vector.broadcast %7 : vector<1x290xf32> to vector<8x290xf32>
    %9 = arith.subf %1, %8 : vector<8x290xf32>
    %10 = arith.mulf %9, %9 : vector<8x290xf32>
    %cst_7 = arith.constant dense<0.000000e+00> : vector<290xf32>
    %11 = vector.multi_reduction <add>, %10, %cst_7 [0] : vector<8x290xf32> to vector<290xf32>
    %12 = vector.shape_cast %11 : vector<290xf32> to vector<1x290xf32>
    %cst_8 = arith.constant 8.000000e+00 : f32
    %13 = vector.broadcast %cst_8 : f32 to vector<1x290xf32>
    %14 = arith.divf %12, %13 : vector<1x290xf32>
    %cst_9 = arith.constant 9.99999997E-7 : f32
    %15 = vector.broadcast %cst_9 : f32 to vector<1x290xf32>
    %16 = arith.addf %14, %15 : vector<1x290xf32>
    %17 = math.rsqrt %16 : vector<1x290xf32>
    %18 = vector.broadcast %17 : vector<1x290xf32> to vector<8x290xf32>
    %19 = arith.mulf %9, %18 : vector<8x290xf32>
    %20 = vector.broadcast %2 : vector<8x1xf32> to vector<8x290xf32>
    %21 = arith.mulf %19, %20 : vector<8x290xf32>
    %22 = vector.broadcast %3 : vector<8x1xf32> to vector<8x290xf32>
    %23 = arith.addf %21, %22 : vector<8x290xf32>
    %c0_10 = arith.constant 0 : index
    %c0_11 = arith.constant 0 : index
    %24 = vector.load %arg4[%c0_10, %c0_11] : memref<1x290xf32, #tpu.memory_space<vmem>>, vector<1x290xf32>
    %25 = vector.broadcast %24 : vector<1x290xf32> to vector<8x290xf32>
    %26 = arith.mulf %23, %25 : vector<8x290xf32>
    %c0_12 = arith.constant 0 : index
    %c0_13 = arith.constant 0 : index
    %27 = vector.load %arg5[%c0_12, %c0_13] : memref<2x256xf32, #tpu.memory_space<vmem>>, vector<2x256xf32>
    %28 = vector.extract_strided_slice %26 {offsets = [0, 0], sizes = [8, 256], strides = [1, 1]} : vector<8x290xf32> to vector<8x256xf32>
    %29 = vector.extract_strided_slice %27 {offsets = [0, 0], sizes = [1, 256], strides = [1, 1]} : vector<2x256xf32> to vector<1x256xf32>
    %30 = vector.broadcast %29 : vector<1x256xf32> to vector<8x256xf32>
    %31 = arith.mulf %28, %30 : vector<8x256xf32>
    %32 = vector.extract_strided_slice %26 {offsets = [0, 1], sizes = [8, 256], strides = [1, 1]} : vector<8x290xf32> to vector<8x256xf32>
    %33 = vector.extract_strided_slice %26 {offsets = [0, 2], sizes = [8, 256], strides = [1, 1]} : vector<8x290xf32> to vector<8x256xf32>
    %34 = vector.extract_strided_slice %27 {offsets = [1, 0], sizes = [1, 256], strides = [1, 1]} : vector<2x256xf32> to vector<1x256xf32>
    %35 = vector.broadcast %34 : vector<1x256xf32> to vector<8x256xf32>
    %36 = arith.mulf %33, %35 : vector<8x256xf32>
    %37 = vector.extract_strided_slice %26 {offsets = [0, 16], sizes = [8, 256], strides = [1, 1]} : vector<8x290xf32> to vector<8x256xf32>
    %38 = vector.extract_strided_slice %27 {offsets = [0, 0], sizes = [1, 256], strides = [1, 1]} : vector<2x256xf32> to vector<1x256xf32>
    %39 = vector.broadcast %38 : vector<1x256xf32> to vector<8x256xf32>
    %40 = arith.mulf %37, %39 : vector<8x256xf32>
    %41 = vector.extract_strided_slice %26 {offsets = [0, 17], sizes = [8, 256], strides = [1, 1]} : vector<8x290xf32> to vector<8x256xf32>
    %42 = vector.extract_strided_slice %26 {offsets = [0, 18], sizes = [8, 256], strides = [1, 1]} : vector<8x290xf32> to vector<8x256xf32>
    %43 = vector.extract_strided_slice %27 {offsets = [1, 0], sizes = [1, 256], strides = [1, 1]} : vector<2x256xf32> to vector<1x256xf32>
    %44 = vector.broadcast %43 : vector<1x256xf32> to vector<8x256xf32>
    %45 = arith.mulf %42, %44 : vector<8x256xf32>
    %46 = vector.extract_strided_slice %26 {offsets = [0, 32], sizes = [8, 256], strides = [1, 1]} : vector<8x290xf32> to vector<8x256xf32>
    %47 = vector.extract_strided_slice %27 {offsets = [0, 0], sizes = [1, 256], strides = [1, 1]} : vector<2x256xf32> to vector<1x256xf32>
    %48 = vector.broadcast %47 : vector<1x256xf32> to vector<8x256xf32>
    %49 = arith.mulf %46, %48 : vector<8x256xf32>
    %50 = vector.extract_strided_slice %26 {offsets = [0, 33], sizes = [8, 256], strides = [1, 1]} : vector<8x290xf32> to vector<8x256xf32>
    %51 = vector.extract_strided_slice %26 {offsets = [0, 34], sizes = [8, 256], strides = [1, 1]} : vector<8x290xf32> to vector<8x256xf32>
    %52 = vector.extract_strided_slice %27 {offsets = [1, 0], sizes = [1, 256], strides = [1, 1]} : vector<2x256xf32> to vector<1x256xf32>
    %53 = vector.broadcast %52 : vector<1x256xf32> to vector<8x256xf32>
    %54 = arith.mulf %51, %53 : vector<8x256xf32>
    %55 = tpu.concatenate %31, %32, %36, %40, %41, %45, %49, %50, %54 in 0 : vector<8x256xf32>, vector<8x256xf32>, vector<8x256xf32>, vector<8x256xf32>, vector<8x256xf32>, vector<8x256xf32>, vector<8x256xf32>, vector<8x256xf32>, vector<8x256xf32> -> vector<72x256xf32>
    %c0_14 = arith.constant 0 : index
    %c0_15 = arith.constant 0 : index
    %56 = vector.load %arg6[%c0_14, %c0_15] : memref<16x72xbf16, #tpu.memory_space<vmem>>, vector<16x72xbf16>
    %57 = arith.truncf %55 : vector<72x256xf32> to vector<72x256xbf16>
    %cst_16 = arith.constant dense<0.000000e+00> : vector<16x256xf32>
    %58 = tpu.matmul %56, %57, %cst_16 {dimension_numbers = #tpu.dot_dimension_numbers<[1], [0], [0], [1], [0, 0, 1, 1], [], []>} : vector<16x72xbf16>, vector<72x256xbf16>, vector<16x256xf32> -> vector<16x256xf32>
    %c0_17 = arith.constant 0 : index
    %c0_18 = arith.constant 0 : index
    %59 = vector.load %arg7[%c0_17, %c0_18] : memref<16x1xf32, #tpu.memory_space<vmem>>, vector<16x1xf32>
    %60 = vector.broadcast %59 : vector<16x1xf32> to vector<16x256xf32>
    %61 = arith.addf %58, %60 : vector<16x256xf32>
    %cst_19 = arith.constant 5.000000e-01 : f32
    %62 = vector.broadcast %cst_19 : f32 to vector<16x256xf32>
    %63 = arith.mulf %62, %61 : vector<16x256xf32>
    %cst_20 = arith.constant 0.707106769 : f32
    %64 = vector.broadcast %cst_20 : f32 to vector<16x256xf32>
    %65 = arith.mulf %61, %64 : vector<16x256xf32>
    %cst_21 = arith.constant 0.000000e+00 : f32
    %66 = vector.broadcast %cst_21 : f32 to vector<16x256xf32>
    %67 = arith.cmpf oge, %65, %66 : vector<16x256xf32>
    %cst_22 = arith.constant 1.000000e+00 : f32
    %cst_23 = arith.constant -1.000000e+00 : f32
    %68 = vector.broadcast %cst_22 : f32 to vector<16x256xf32>
    %69 = vector.broadcast %cst_23 : f32 to vector<16x256xf32>
    %70 = arith.select %67, %68, %69 : vector<16x256xi1>, vector<16x256xf32>
    %71 = math.absf %65 : vector<16x256xf32>
    %cst_24 = arith.constant 0.327591091 : f32
    %72 = vector.broadcast %cst_24 : f32 to vector<16x256xf32>
    %73 = arith.mulf %72, %71 : vector<16x256xf32>
    %cst_25 = arith.constant 1.000000e+00 : f32
    %74 = vector.broadcast %cst_25 : f32 to vector<16x256xf32>
    %75 = arith.addf %74, %73 : vector<16x256xf32>
    %cst_26 = arith.constant 1.000000e+00 : f32
    %76 = vector.broadcast %cst_26 : f32 to vector<16x256xf32>
    %77 = arith.divf %76, %75 : vector<16x256xf32>
    %cst_27 = arith.constant 1.06140542 : f32
    %78 = vector.broadcast %cst_27 : f32 to vector<16x256xf32>
    %79 = arith.mulf %78, %77 : vector<16x256xf32>
    %cst_28 = arith.constant -1.45315206 : f32
    %80 = vector.broadcast %cst_28 : f32 to vector<16x256xf32>
    %81 = arith.addf %79, %80 : vector<16x256xf32>
    %82 = arith.mulf %81, %77 : vector<16x256xf32>
    %cst_29 = arith.constant 1.42141378 : f32
    %83 = vector.broadcast %cst_29 : f32 to vector<16x256xf32>
    %84 = arith.addf %82, %83 : vector<16x256xf32>
    %85 = arith.mulf %84, %77 : vector<16x256xf32>
    %cst_30 = arith.constant -0.284496725 : f32
    %86 = vector.broadcast %cst_30 : f32 to vector<16x256xf32>
    %87 = arith.addf %85, %86 : vector<16x256xf32>
    %88 = arith.mulf %87, %77 : vector<16x256xf32>
    %cst_31 = arith.constant 0.254829586 : f32
    %89 = vector.broadcast %cst_31 : f32 to vector<16x256xf32>
    %90 = arith.addf %88, %89 : vector<16x256xf32>
    %91 = arith.mulf %90, %77 : vector<16x256xf32>
    %cst_32 = arith.constant 0.000000e+00 : f32
    %92 = vector.broadcast %cst_32 : f32 to vector<16x256xf32>
    %93 = arith.subf %92, %71 : vector<16x256xf32>
    %94 = arith.mulf %93, %71 : vector<16x256xf32>
    %95 = math.exp %94 : vector<16x256xf32>
    %96 = arith.mulf %91, %95 : vector<16x256xf32>
    %cst_33 = arith.constant 1.000000e+00 : f32
    %97 = vector.broadcast %cst_33 : f32 to vector<16x256xf32>
    %98 = arith.subf %97, %96 : vector<16x256xf32>
    %99 = arith.mulf %70, %98 : vector<16x256xf32>
    %cst_34 = arith.constant 1.000000e+00 : f32
    %100 = vector.broadcast %cst_34 : f32 to vector<16x256xf32>
    %101 = arith.addf %100, %99 : vector<16x256xf32>
    %102 = arith.mulf %63, %101 : vector<16x256xf32>
    %c0_35 = arith.constant 0 : index
    %c0_36 = arith.constant 0 : index
    %103 = vector.load %arg8[%c0_35, %c0_36] : memref<8x16xbf16, #tpu.memory_space<vmem>>, vector<8x16xbf16>
    %104 = arith.truncf %102 : vector<16x256xf32> to vector<16x256xbf16>
    %cst_37 = arith.constant dense<0.000000e+00> : vector<8x256xf32>
    %105 = tpu.matmul %103, %104, %cst_37 {dimension_numbers = #tpu.dot_dimension_numbers<[1], [0], [0], [1], [0, 0, 1, 1], [], []>} : vector<8x16xbf16>, vector<16x256xbf16>, vector<8x256xf32> -> vector<8x256xf32>
    %c0_38 = arith.constant 0 : index
    %c0_39 = arith.constant 0 : index
    %106 = vector.load %arg9[%c0_38, %c0_39] : memref<8x1xf32, #tpu.memory_space<vmem>>, vector<8x1xf32>
    %107 = vector.broadcast %106 : vector<8x1xf32> to vector<8x256xf32>
    %108 = arith.addf %105, %107 : vector<8x256xf32>
    %109 = vector.extract_strided_slice %1 {offsets = [0, 17], sizes = [8, 256], strides = [1, 1]} : vector<8x290xf32> to vector<8x256xf32>
    %110 = arith.addf %108, %109 : vector<8x256xf32>
    %c0_40 = arith.constant 0 : index
    %c0_41 = arith.constant 0 : index
    %c0_42 = arith.constant 0 : index
    %111 = vector.load %arg10[%c0_40, %c0_41, %c0_42] : memref<1x8x256xf32, #tpu.memory_space<vmem>>, vector<1x8x256xf32>
    %112 = vector.shape_cast %111 : vector<1x8x256xf32> to vector<8x256xf32>
    %113 = vector.shape_cast %110 : vector<8x256xf32> to vector<1x8x256xf32>
    tpu.vector_store %arg10[%c0_40, %c0_41, %c0_42], %113 {strides = array<i32>} : memref<1x8x256xf32, #tpu.memory_space<vmem>>, vector<1x8x256xf32>,
    return
  }
  func.func @transform_0(%arg0: i32) -> (i32, i32, i32) {
    %c0_i32 = arith.constant 0 : i32
    %c0_i32_0 = arith.constant 0 : i32
    %c0_i32_1 = arith.constant 0 : i32
    return %arg0, %c0_i32, %c0_i32_0 : i32, i32, i32
  }
  func.func @transform_1(%arg0: i32) -> (i32, i32) {
    %c0_i32 = arith.constant 0 : i32
    %c0_i32_0 = arith.constant 0 : i32
    %c0_i32_1 = arith.constant 0 : i32
    return %c0_i32, %c0_i32_0 : i32, i32
  }
  func.func @transform_2(%arg0: i32) -> (i32, i32) {
    %c0_i32 = arith.constant 0 : i32
    %c0_i32_0 = arith.constant 0 : i32
    %c0_i32_1 = arith.constant 0 : i32
    return %c0_i32, %c0_i32_0 : i32, i32
  }
  func.func @transform_3(%arg0: i32) -> (i32, i32) {
    %c0_i32 = arith.constant 0 : i32
    %c0_i32_0 = arith.constant 0 : i32
    %c0_i32_1 = arith.constant 0 : i32
    return %c0_i32, %c0_i32_0 : i32, i32
  }
  func.func @transform_4(%arg0: i32) -> (i32, i32) {
    %c0_i32 = arith.constant 0 : i32
    %c0_i32_0 = arith.constant 0 : i32
    %c0_i32_1 = arith.constant 0 : i32
    return %c0_i32, %c0_i32_0 : i32, i32
  }
  func.func @transform_5(%arg0: i32) -> (i32, i32) {
    %c0_i32 = arith.constant 0 : i32
    %c0_i32_0 = arith.constant 0 : i32
    %c0_i32_1 = arith.constant 0 : i32
    return %c0_i32, %c0_i32_0 : i32, i32
  }
  func.func @transform_6(%arg0: i32) -> (i32, i32) {
    %c0_i32 = arith.constant 0 : i32
    %c0_i32_0 = arith.constant 0 : i32
    %c0_i32_1 = arith.constant 0 : i32
    return %c0_i32, %c0_i32_0 : i32, i32
  }
  func.func @transform_7(%arg0: i32) -> (i32, i32) {
    %c0_i32 = arith.constant 0 : i32
    %c0_i32_0 = arith.constant 0 : i32
    %c0_i32_1 = arith.constant 0 : i32
    return %c0_i32, %c0_i32_0 : i32, i32
  }
  func.func @transform_8(%arg0: i32) -> (i32, i32) {
    %c0_i32 = arith.constant 0 : i32
    %c0_i32_0 = arith.constant 0 : i32
    %c0_i32_1 = arith.constant 0 : i32
    return %c0_i32, %c0_i32_0 : i32, i32
  }
  func.func @transform_9(%arg0: i32) -> (i32, i32, i32) {
    %c0_i32 = arith.constant 0 : i32
    %c0_i32_0 = arith.constant 0 : i32
    %c0_i32_1 = arith.constant 0 : i32
    return %arg0, %c0_i32, %c0_i32_0 : i32, i32, i32
  }
}

</mosaic_0001>

<bundles_post_ra>
// kernel: tile.6
= control target key start
LH: loop header
LB: loop body
LE: loop exit
PB: predicated region body
PF: predicated region fallthrough
CT: control target
= control target key end

     0   :  { %s22_s0 = inlined_call_operand.vmem [shape: f32[8], index: 0, kind: input, shape index: {}]   ;;  %s23_s1 = inlined_call_operand.vmem [shape: f32[8,8], index: 1, kind: output, shape index: {}]  }
   0x1   :  { %v4_v0 = vld [vmem:[%s22_s0] ss:$0 sm:$0xff] }
   0x2   :  { %5 = vst [vmem:[%s23_s1] sm:$0xff] %v4_v0 }

// kernel: att_block_forward.3
= control target key start
LH: loop header
LB: loop body
LE: loop exit
PB: predicated region body
PF: predicated region fallthrough
CT: control target
= control target key end

     0   :  { %s1169_s30 = smov 0   ;;  %s1370_s0 = inlined_call_operand.vmem [shape: f32[2,8,290], index: 0, kind: input, shape index: {}]   ;;  %s1371_s1 = inlined_call_operand.vmem [shape: f32[8,1], index: 1, kind: input, shape index: {}]   ;;  %s1372_s2 = inlined_call_operand.vmem [shape: f32[8,1], index: 2, kind: input, shape index: {}]   ;;  %s1373_s3 = inlined_call_operand.vmem [shape: f32[1,290], index: 3, kind: input, shape index: {}]   ;;  %s1374_s4 = inlined_call_operand.vmem [shape: f32[2,256], index: 4, kind: input, shape index: {}]   ;;  %s1375_s5 = inlined_call_operand.vmem [shape: bf16[16,72], index: 5, kind: input, shape index: {}]   ;;  %s1376_s6 = inlined_call_operand.vmem [shape: f32[16,1], index: 6, kind: input, shape index: {}]   ;;  %s1377_s7 = inlined_call_operand.vmem [shape: bf16[8,16], index: 7, kind: input, shape index: {}]   ;;  %s1378_s8 = inlined_call_operand.vmem [shape: f32[8,1], index: 8, kind: input, shape index: {}]   ;;  %s1379_s9 = inlined_call_operand.vmem [shape: f32[2,8,256], index: 9, kind: output, shape index: {}]  }
   0x1 LB: > { %s983_s10 = sadd.s32 4294967295, %s1101_s30   ;;  %p987_p0 = scmp.ge.s32.totalorder %s1101_s30, 1  ;;  %s1101_s30 = sphi %s1169_s30, %s19_s30  }
   0x2   : > { %p287_p1 = scmp.lt.s32.totalorder %s1101_s30, 3 }
   0x4   : > { %p288_p2 = pnand %p987_p0, %p287_p1 }
   0x5   : > { %s1104_s15 = smov (!%p288_p2), 34   ;;  %s1105_s16 = smov (!%p288_p2), 32  }
   0x6   : > { %291 = sbr.rel (%p288_p2) target bundleno = 637 (0x27d), region = 56  ;;  %p323_p3 = scmp.lt.s32.totalorder (!%p288_p2), %s983_s10, 1 }
   0x7   : > { %s1106_s19 = smov (!%p288_p2), 18   ;;  %s1107_s20 = smov (!%p288_p2), 2  }
   0x8   : > { %s1109_s25 = smov (!%p288_p2), 16   ;;  %s1110_s28 = smov (!%p288_p2), 95  }
   0x9   : > { %s1111_s29 = smov (!%p288_p2), 111   ;;  %s1112_s11 = smov (!%p288_p2), 96  }
   0xa   : > { %s1113_s12 = smov (!%p288_p2), 94   ;;  %s1114_s13 = smov (!%p288_p2), 110  }
   0xb   : > { %v337_v0 = vld [vmem:[%s1371_s1] sm:$0xff]  ;;  %v1103_v2 = vmov 0   ;;  %s1381_s10 = smov (!%p323_p3, %s983_s10), 1  ;;  %v1108_v12 = vmov 8.0   ;;  %vm351_vm0 = vcmask 277504   ;;  %vm520_vm11 = vcmask 261120  }
   0xc   : > { %v460_v1 = vld [vmem:[%s1374_s4] sm:$0xf]  ;;  %1028 = vset.pattern.permute.xlu0 %v1103_v2  ;;  %1069 = vset.pattern.permute.xlu1 %v1103_v2  ;;  %s1003_s21 = smul.u32 24, %s1381_s10  ;;  %1071 = vrcp.f32 %v1108_v12  ;;  %vm508_vm12 = vcmask 146432   ;;  %vm482_vm13 = vcmask 15360   ;;  %vm496_vm14 = vcmask 130048  }
   0xd   : > { %v470_v3 = vperm.slane %v460_v1, 1  ;;  %v462_v4 = vperm.slane %v460_v1, 0  ;;  %435 = vperm.xlu0 %1028, %v337_v0   ;;  %1070 = vset.pattern.permute.xlu2 %v1103_v2  ;;  %v471_v7 = vperm.slane %v460_v1, 3  ;;  %v463_v8 = vperm.slane %v460_v1, 2  ;;  %v338_v9 = vld [vmem:[%s1372_s2] sm:$0xff]  ;;  %s1115_s14 = smov 126  }
   0xe   : > { %s327_s24 = scalar_lea.vmem %s1370_s0, %s1003_s21  ;;  %vm640_vm15 = vcmask 769024   ;;  %s1001_s27 = sshll.u32 %s1381_s10, 4 }
   0xf   : > { %v474_v5 = vperm.slane %v470_v3, 1  ;;  %v1183_v6 = vperm.slane %v462_v4, 0  ;;  %v475_v10 = vperm.slane %v471_v7, 1  ;;  %v1189_v11 = vperm.slane %v463_v8, 0  ;;  %v1198_v13 = vld [vmem:[%s327_s24 + $0x10] sm:$0xff]  ;;  %v1204_v15 = vld [vmem:[%s327_s24] sm:$0xff] }
  0x10   : > { %v352_v14 = vsel %vm351_vm0, %v1198_v13, 0.0  ;;  %v1206_v16 = vld [vmem:[%s327_s24 + $0x8] sm:$0xff]  ;;  %v339_v18 = vrot.slane %v1204_v15, 4 }
  0x11   : > { %528 = vrot.lane.b32.xlu1 %v474_v5, %s1104_s15  ;;  %516 = vrot.lane.b32.xlu2 %v1183_v6, %s1105_s16  ;;  %v353_v17 = vrot.slane %v352_v14, 4  ;;  %v345_v19 = vrot.slane %v1206_v16, 4 }
  0x12   : > { %v1072_v20 = vpop.eup %1071  ;;  %v340_v23 = vadd.f32 %v339_v18, %v1204_v15 }
  0x13   : > { %v354_v21 = vadd.f32 %v353_v17, %v352_v14  ;;  %v360_v22 = vmul.f32 8.0, %v1072_v20  ;;  %v346_v24 = vadd.f32 %v345_v19, %v1206_v16  ;;  %vm364_vm1 = vweird.f32 %v1072_v20 }
  0x14   : > { %v341_v27 = vrot.slane %v340_v23, 2 }
  0x15   : > { %443 = vperm.xlu0 %1028, %v338_v9   ;;  %v355_v25 = vrot.slane %v354_v21, 2  ;;  %v361_v26 = vsub.f32 1.0, %v360_v22  ;;  %v347_v28 = vrot.slane %v346_v24, 2 }
  0x16   : > { %v342_v31 = vadd.f32 %v341_v27, %v340_v23 }
  0x17   : > { %v356_v29 = vadd.f32 %v355_v25, %v354_v21  ;;  %v362_v30 = vmul.f32 %v1072_v20, %v361_v26  ;;  %v348_v32 = vadd.f32 %v347_v28, %v346_v24 }
  0x18   : > { %v343_v35 = vrot.slane %v342_v31, 1 }
  0x19   : > { %530 = vrot.lane.b32.xlu1 %v475_v10, %s1104_s15  ;;  %518 = vrot.lane.b32.xlu2 %v1189_v11, %s1105_s16  ;;  %v357_v33 = vrot.slane %v356_v29, 1  ;;  %v363_v34 = vadd.f32 %v1072_v20, %v362_v30  ;;  %v349_v36 = vrot.slane %v348_v32, 1  ;;  %s1116_s15 = smov 127   ;;  %s1117_s16 = smov 112  }
  0x1a   : > { %v344_v39 = vadd.f32 %v343_v35, %v342_v31 }
  0x1b   : > { %v358_v37 = vadd.f32 %v357_v33, %v356_v29  ;;  %v365_v38 = vsel %vm364_vm1, %v1072_v20, %v363_v34  ;;  %v350_v40 = vadd.f32 %v349_v36, %v348_v32  ;;  %vm626_vm1 = vcmask 777216  }
  0x1c   : > { %v366_v42 = vmul.f32 %v365_v38, %v344_v39 }
  0x1d   : > { %504 = vrot.lane.b32.xlu0 %v474_v5, %s1106_s19  ;;  %v368_v41 = vmul.f32 %v365_v38, %v358_v37  ;;  %v367_v43 = vmul.f32 %v365_v38, %v350_v40 }
  0x1e   : > { %v1216_v45 = vsub.f32 %v1204_v15, %v366_v42 }
  0x1f   : > { %v1213_v44 = vsub.f32 %v1198_v13, %v368_v41  ;;  %v1219_v46 = vsub.f32 %v1206_v16, %v367_v43  ;;  %v449_v43 = vld [vmem:[%s1373_s3] sm:$0x7] }
  0x20   : > { %v372_v48 = vmul.f32 %v1216_v45, %v1216_v45 }
  0x21   : > { %506 = vrot.lane.b32.xlu1 %v475_v10, %s1106_s19  ;;  %478 = vrot.lane.b32.xlu2 %v474_v5, %s1107_s20  ;;  %v374_v47 = vmul.f32 %v1213_v44, %v1213_v44  ;;  %v373_v49 = vmul.f32 %v1219_v46, %v1219_v46 }
  0x22   : > { %v375_v51 = vrot.slane %v372_v48, 4 }
  0x23   : > { %v387_v50 = vsel %vm351_vm0, %v374_v47, 0.0  ;;  %v381_v52 = vrot.slane %v373_v49, 4  ;;  %v451_v47 = vperm.slane %v449_v43, 0 }
  0x24   : > { %v388_v53 = vrot.slane %v387_v50, 4  ;;  %v376_v54 = vadd.f32 %v375_v51, %v372_v48  ;;  %v452_v48 = vperm.slane %v449_v43, 1 }
  0x25   : > { %480 = vrot.lane.b32.xlu0 %v475_v10, %s1107_s20  ;;  %v382_v55 = vadd.f32 %v381_v52, %v373_v49  ;;  %v453_v52 = vperm.slane %v449_v43, 2 }
  0x26   : > { %v389_v56 = vadd.f32 %v388_v53, %v387_v50  ;;  %v377_v57 = vrot.slane %v376_v54, 2 }
  0x27   : > { %v383_v58 = vrot.slane %v382_v55, 2 }
  0x28   : > { %v390_v59 = vrot.slane %v389_v56, 2  ;;  %v378_v60 = vadd.f32 %v377_v57, %v376_v54 }
  0x29   : > { %492 = vrot.lane.b32.xlu1 %v1183_v6, %s1109_s25  ;;  %494 = vrot.lane.b32.xlu2 %v1189_v11, %s1109_s25  ;;  %v384_v61 = vadd.f32 %v383_v58, %v382_v55 }
  0x2a   : > { %v391_v62 = vadd.f32 %v390_v59, %v389_v56  ;;  %v379_v63 = vrot.slane %v378_v60, 1 }
  0x2b   : > { %v385_v0 = vrot.slane %v384_v61, 1 }
  0x2c   : > { %v392_v1 = vrot.slane %v391_v62, 1  ;;  %v380_v2 = vadd.f32 %v379_v63, %v378_v60 }
  0x2d   : > { %v386_v3 = vadd.f32 %v385_v0, %v384_v61 }
  0x2e   : > { %v393_v4 = vadd.f32 %v392_v1, %v391_v62  ;;  %v394_v5 = vmul.f32 %v380_v2, %v365_v38 }
  0x2f   : > { %v395_v7 = vmul.f32 %v386_v3, %v365_v38 }
  0x30   : > { %v396_v8 = vmul.f32 %v393_v4, %v365_v38  ;;  %v397_v9 = vadd.f32 1e-06, %v394_v5 }
  0x31   : > { %v398_v10 = vadd.f32 1e-06, %v395_v7 }
  0x32   : > { %v399_v12 = vadd.f32 1e-06, %v396_v8  ;;  %1073 = vrsqrt.f32 %v397_v9  ;;  %vm406_vm2 = vweird.f32 %v397_v9 }
  0x33   : > { %1075 = vrsqrt.f32 %v398_v10  ;;  %vm416_vm4 = vweird.f32 %v398_v10 }
  0x34   : > { %1077 = vrsqrt.f32 %v399_v12  ;;  %vm426_vm6 = vweird.f32 %v399_v12 }
  0x38   : > { %v1074_v14 = vpop.eup %1073 }
  0x39   : > { %v1076_v17 = vpop.eup %1075  ;;  %v401_v19 = vmul.f32 %v1074_v14, %v397_v9  ;;  %vm407_vm3 = vweird.f32 %v1074_v14 }
  0x3a   : > { %v1078_v18 = vpop.eup %1077  ;;  %v411_v20 = vmul.f32 %v1076_v17, %v398_v10  ;;  %vm417_vm5 = vweird.f32 %v1076_v17  ;;  %vm408_vm8 = vmor %vm406_vm2, %vm407_vm3  ;;  %vm615_vm2 = vcmask 785408   ;;  %vm587_vm3 = vcmask 908288  }
  0x3b   : > { %v421_v21 = vmul.f32 %v1078_v18, %v399_v12  ;;  %v402_v22 = vmul.f32 %v1074_v14, %v401_v19  ;;  %vm427_vm7 = vweird.f32 %v1078_v18  ;;  %vm418_vm9 = vmor %vm416_vm4, %vm417_vm5  ;;  %vm601_vm4 = vcmask 900096  }
  0x3c   : > { %v412_v23 = vmul.f32 %v1076_v17, %v411_v20  ;;  %vm428_vm10 = vmor %vm426_vm6, %vm427_vm7  ;;  %vm576_vm5 = vcmask 916480   ;;  %vm562_vm6 = vcmask 1031168   ;;  %vm548_vm7 = vcmask 1039360  }
  0x3d   : > { %v422_v24 = vmul.f32 %v1078_v18, %v421_v21  ;;  %v403_v25 = vmul.f32 0.5, %v402_v22 }
  0x3e   : > { %v413_v26 = vmul.f32 0.5, %v412_v23 }
  0x3f   : > { %v423_v27 = vmul.f32 0.5, %v422_v24  ;;  %v404_v28 = vsub.f32 1.5, %v403_v25 }
  0x40   : > { %v414_v29 = vsub.f32 1.5, %v413_v26 }
  0x41   : > { %v424_v30 = vsub.f32 1.5, %v423_v27  ;;  %v405_v31 = vmul.f32 %v1074_v14, %v404_v28 }
  0x42   : > { %v415_v32 = vmul.f32 %v1076_v17, %v414_v29 }
  0x43   : > { %v425_v33 = vmul.f32 %v1078_v18, %v424_v30  ;;  %v409_v35 = vsel %vm408_vm8, %v1074_v14, %v405_v31  ;;  %vm674_vm8 = vcmask 588800  }
  0x44   : > { %v419_v36 = vsel %vm418_vm9, %v1076_v17, %v415_v32  ;;  %v430_v39 = vmul.f32 %v409_v35, %v1216_v45  ;;  %v876_v32 = vld [vmem:[%s1378_s8] sm:$0xff] }
  0x45   : > { %v429_v37 = vsel %vm428_vm10, %v1078_v18, %v425_v33  ;;  %v431_v40 = vmul.f32 %v419_v36, %v1219_v46 }
  0x46   : > { %v432_v41 = vmul.f32 %v429_v37, %v1213_v44 }
  0x6b   : > { %v517_v38 = vpop.permute.xlu2 %516 }
  0x73   : > { %v519_v56 = vpop.permute.xlu2 %518 }
  0x74   : > { %v521_v59 = vsel %vm520_vm11, %v517_v38, %v519_v56 }
  0x7b   : > { %v479_v10 = vpop.permute.xlu2 %478 }
  0x7f   : > { %v436_v34 = vpop.permute.xlu0 %435 }
  0x80   : > { %v438_v49 = vmul.f32 %v436_v34, %v430_v39  ;;  %v439_v50 = vmul.f32 %v436_v34, %v431_v40  ;;  %v440_v51 = vmul.f32 %v436_v34, %v432_v41 }
  0x83   : > { %v529_v42 = vpop.permute.xlu1 %528  ;;  %v495_v24 = vpop.permute.xlu2 %494 }
  0x87   : > { %v444_v53 = vpop.permute.xlu0 %443 }
  0x88   : > { %v446_v54 = vadd.f32 %v444_v53, %v438_v49  ;;  %v447_v55 = vadd.f32 %v444_v53, %v439_v50  ;;  %v448_v45 = vadd.f32 %v444_v53, %v440_v51 }
  0x8a   : > { %v1234_v46 = vmul.f32 %v451_v47, %v446_v54  ;;  %v1236_v44 = vmul.f32 %v452_v48, %v447_v55  ;;  %v459_v57 = vmul.f32 %v453_v52, %v448_v45 }
  0x8b   : > { %v531_v58 = vpop.permute.xlu1 %530 }
  0x8c   : > { %624 = vrot.lane.b32.xlu2 %v459_v57, %s1110_s28  ;;  %v1034_v60 = vpack.i.bf16 %v1236_v44, %v1234_v46  ;;  %v532_v61 = vsel %vm351_vm0, %v529_v42, %v531_v58  ;;  %v525_v62 = vmul.f32 %v517_v38, %v1234_v46  ;;  %v526_v63 = vmul.f32 %v521_v59, %v1236_v44 }
  0x8d   : > { %v537_v0 = vmul.f32 %v532_v61, %v1236_v44  ;;  %v536_v1 = vmul.f32 %v529_v42, %v1234_v46  ;;  %v527_v17 = vmul.f32 %v519_v56, %v459_v57  ;;  %v538_v18 = vmul.f32 %v531_v58, %v459_v57  ;;  %v658_v58 = vld [vmem:[%s1376_s6 + $0x8] sm:$0xff] }
  0x8e   : > { %1035 = vrot.lane.b32.xlu0 %v1034_v60, %s1111_s29  ;;  %1030 = vrot.lane.b32.xlu1 %v1034_v60, %s1110_s28  ;;  %v1044_v4 = vpack.i.bf16 %v526_v63, %v525_v62  ;;  %v487_v23 = vmul.f32 %v479_v10, %v1234_v46  ;;  %v503_v31 = vmul.f32 %v495_v24, %v459_v57  ;;  %vm678_vm0 = vcmask 1043456  }
  0x8f   : > { %v505_v2 = vpop.permute.xlu0 %504  ;;  %v1039_v7 = vpack.i.bf16 %v537_v0, %v536_v1 }
  0x90   : > { %v513_v9 = vmul.f32 %v505_v2, %v1234_v46 }
  0x93   : > { %v507_v3 = vpop.permute.xlu1 %506 }
  0x94   : > { %v509_v5 = vsel %vm508_vm12, %v505_v2, %v507_v3  ;;  %1045 = vrot.lane.b32.xlu2 %v1044_v4, %s1112_s11  ;;  %v515_v25 = vmul.f32 %v507_v3, %v459_v57 }
  0x95   : > { %v514_v8 = vmul.f32 %v509_v5, %v1236_v44 }
  0x96   : > { %1040 = vrot.lane.b32.xlu0 %v1039_v7, %s1113_s12  ;;  %585 = vrot.lane.b32.xlu1 %v459_v57, %s1111_s29 }
  0x97   : > { %v1049_v12 = vpack.i.bf16 %v514_v8, %v513_v9  ;;  %v481_v14 = vpop.permute.xlu0 %480 }
  0x98   : > { %v483_v19 = vsel %vm482_vm13, %v479_v10, %v481_v14  ;;  %v489_v21 = vmul.f32 %v481_v14, %v459_v57 }
  0x99   : > { %v488_v20 = vmul.f32 %v483_v19, %v1236_v44 }
  0x9b   : > { %v493_v22 = vpop.permute.xlu1 %492  ;;  %v1054_v27 = vpack.i.bf16 %v488_v20, %v487_v23 }
  0x9c   : > { %1050 = vrot.lane.b32.xlu2 %v1049_v12, %s1114_s13  ;;  %v497_v26 = vsel %vm496_vm14, %v493_v22, %v495_v24  ;;  %v501_v28 = vmul.f32 %v493_v22, %v1234_v46 }
  0x9d   : > { %v502_v29 = vmul.f32 %v497_v26, %v1236_v44 }
  0x9e   : > { %613 = vrot.lane.b32.xlu0 %v527_v17, %s1112_s11  ;;  %638 = vrot.lane.b32.xlu1 %v538_v18, %s1113_s12  ;;  %s332_s11 = scalar_lea.vmem %s1379_s9, %s1001_s27 }
  0x9f   : > { %v1059_v30 = vpack.i.bf16 %v502_v29, %v501_v28 }
  0xa4   : > { %560 = vrot.lane.b32.xlu2 %v489_v21, %s1115_s14 }
  0xa6   : > { %599 = vrot.lane.b32.xlu0 %v515_v25, %s1114_s13  ;;  %1055 = vrot.lane.b32.xlu1 %v1054_v27, %s1115_s14 }
  0xac   : > { %1065 = vrot.lane.b32.xlu2 %v1034_v60, %s1116_s15 }
  0xae   : > { %1060 = vrot.lane.b32.xlu0 %v1059_v30, %s1117_s16  ;;  %574 = vrot.lane.b32.xlu1 %v503_v31, %s1117_s16  ;;  %v468_v31 = vmul.f32 %v1183_v6, %v1234_v46 }
  0xb4   : > { %666 = vperm.xlu2 %1070, %v658_v58  }
  0xb6   : > { %546 = vrot.lane.b32.xlu0 %v459_v57, %s1116_s15  ;;  %v657_v57 = vld [vmem:[%s1376_s6] sm:$0xff] }
  0xb7   : > { %661 = vperm.xlu1 %1069, %v657_v57  }
  0xbc   : > { %916 = vrot.lane.b32.xlu2 %v1206_v16, %s1111_s29 }
  0xbe   : > { %879 = vperm.xlu0 %1028, %v876_v32  }
  0xbf   : > { %914 = vrot.lane.b32.xlu1 %v1204_v15, %s1111_s29 }
  0xc6   : > { %918 = vrot.lane.b32.xlu0 %v1198_v13, %s1111_s29 }
  0xe6   : > { %v625_v33 = vpop.permute.xlu2 %624 }
  0xee   : > { %v1046_v34 = vpop.permute.xlu2 %1045 }
  0xef   : > { %v1048_v48 = vunpack.i.h.bf16 %v1046_v34  ;;  %v1047_v49 = vunpack.i.l.bf16 %v1046_v34  ;;  %v469_v34 = vmul.f32 %v1189_v11, %v1236_v44 }
  0xf1   : > { %v616_v56 = vsel %vm615_vm2, %v1047_v49, %v1048_v48 }
  0xf6   : > { %v1051_v41 = vpop.permute.xlu2 %1050 }
  0xf7   : > { %v1053_v54 = vunpack.i.h.bf16 %v1051_v41  ;;  %v1052_v55 = vunpack.i.l.bf16 %v1051_v41 }
  0xf9   : > { %v602_v1 = vsel %vm601_vm4, %v1052_v55, %v1053_v54 }
  0xfe   : > { %v561_v0 = vpop.permute.xlu2 %560 }
 0x100   : > { %v1036_v35 = vpop.permute.xlu0 %1035  ;;  %v1031_v36 = vpop.permute.xlu1 %1030 }
 0x101   : > { %v1033_v42 = vunpack.i.h.bf16 %v1031_v36  ;;  %v1032_v43 = vunpack.i.l.bf16 %v1031_v36  ;;  %v1038_v13 = vunpack.i.h.bf16 %v1036_v35  ;;  %v1037_v51 = vunpack.i.l.bf16 %v1036_v35  ;;  %v1002_v36 = vld [vmem:[%s1375_s5] sm:$0xff] }
 0x103   : > { %v627_v53 = vsel %vm626_vm1, %v1032_v43, %v1033_v42  ;;  %v588_v62 = vsel %vm587_vm3, %v1037_v51, %v1038_v13  ;;  %v628_v5 = vsel %vm626_vm1, %v1033_v42, %v625_v33 }
 0x104   : > { %v653_v60 = vpack.c.bf16 %v627_v53, %v616_v56  ;;  %v651_v4 = vpack.c.bf16 %v602_v1, %v588_v62 }
 0x106   : > { %v1066_v17 = vpop.permute.xlu2 %1065 }
 0x107   : > { %v1068_v21 = vunpack.i.h.bf16 %v1066_v17  ;;  %v1067_v22 = vunpack.i.l.bf16 %v1066_v17 }
 0x108   : > { %v1041_v37 = vpop.permute.xlu0 %1040  ;;  %v586_v38 = vpop.permute.xlu1 %585 }
 0x109   : > { %v1043_v39 = vunpack.i.h.bf16 %v1041_v37  ;;  %v1042_v40 = vunpack.i.l.bf16 %v1041_v37  ;;  %v589_v9 = vsel %vm587_vm3, %v1038_v13, %v586_v38  ;;  %v549_v30 = vsel %vm548_vm7, %v1067_v22, %v1068_v21 }
 0x10a   : > { %v647_v33 = vpack.c.bf16 %v549_v30, %v468_v31 }
 0x10b   : > { %v641_v47 = vsel %vm640_vm15, %v1042_v40, %v1043_v39 }
 0x10c   : > { %v655_v50 = vpack.c.bf16 %v641_v47, %v641_v47 }
 0x10e   : > { %v680_v52 = vsel %vm678_vm0, %v655_v50, 0  ;;  %v667_v47 = vpop.permute.xlu2 %666 }
 0x10f   : > { %688 = vmatpush.bf16.msra.mxu0 %v680_v52 }
 0x110   : > { %v614_v45 = vpop.permute.xlu0 %613  ;;  %v639_v59 = vpop.permute.xlu1 %638 }
 0x111   : > { %v642_v61 = vsel %vm640_vm15, %v1043_v39, %v639_v59  ;;  %v617_v2 = vsel %vm615_vm2, %v1048_v48, %v614_v45 }
 0x112   : > { %v656_v63 = vpack.c.bf16 %v642_v61, %v642_v61  ;;  %v654_v8 = vpack.c.bf16 %v628_v5, %v617_v2 }
 0x113   : > { %689 = vmatpush.bf16.msra.mxu0 %v653_v60 }
 0x114   : > { %v683_v3 = vsel %vm678_vm0, %v656_v63, 0 }
 0x115   : > { %702 = vmatpush.bf16.msra.mxu1 %v683_v3 }
 0x117   : > { %690 = vmatpush.bf16.msra.mxu0 %v651_v4 }
 0x118   : > { %v600_v7 = vpop.permute.xlu0 %599  ;;  %v1056_v12 = vpop.permute.xlu1 %1055 }
 0x119   : > { %v603_v10 = vsel %vm601_vm4, %v1053_v54, %v600_v7  ;;  %703 = vmatpush.bf16.msra.mxu1 %v654_v8  ;;  %v1058_v18 = vunpack.i.h.bf16 %v1056_v12  ;;  %v1057_v19 = vunpack.i.l.bf16 %v1056_v12 }
 0x11a   : > { %v652_v14 = vpack.c.bf16 %v603_v10, %v589_v9 }
 0x11b   : > { %v563_v15 = vsel %vm562_vm6, %v1057_v19, %v1058_v18  ;;  %v564_v28 = vsel %vm562_vm6, %v1058_v18, %v561_v0 }
 0x11d   : > { %704 = vmatpush.bf16.msra.mxu1 %v652_v14 }
 0x120   : > { %v1061_v20 = vpop.permute.xlu0 %1060  ;;  %v575_v25 = vpop.permute.xlu1 %574 }
 0x121   : > { %v1063_v23 = vunpack.i.h.bf16 %v1061_v20  ;;  %v1062_v24 = vunpack.i.l.bf16 %v1061_v20 }
 0x123   : > { %v578_v26 = vsel %vm576_vm5, %v1063_v23, %v575_v25  ;;  %v577_v27 = vsel %vm576_vm5, %v1062_v24, %v1063_v23 }
 0x124   : > { %v649_v16 = vpack.c.bf16 %v577_v27, %v563_v15  ;;  %v650_v29 = vpack.c.bf16 %v578_v26, %v564_v28 }
 0x126   : > { %691 = vmatpush.bf16.msra.mxu0 %v649_v16  ;;  %705 = vmatpush.bf16.msra.mxu1 %v650_v29 }
 0x128   : > { %v547_v32 = vpop.permute.xlu0 %546 }
 0x129   : > { %v550_v35 = vsel %vm548_vm7, %v1068_v21, %v547_v32  ;;  %v662_v38 = vpop.permute.xlu1 %661 }
 0x12a   : > { %692 = vmatpush.bf16.msra.mxu0 %v647_v33  ;;  %v648_v37 = vpack.c.bf16 %v550_v35, %v469_v34 }
 0x12c   : > { %706 = vmatpush.bf16.msra.mxu1 %v648_v37 }
 0x12d   : > { %995 = vmatmul.msk.bf16.vlgmr.msra.gmra.mxu0 %vm674_vm8, %v1002_v36 }
 0x12f   : > { %996 = vmatmul.msk.bf16.vlgmr.msra.gmra.mxu1 %vm674_vm8, %v1002_v36 }
 0x1aa   : > { %v694_v39 = vpop.f32.mrf.mxu0 }
 0x1ab   : > { %v1288_v40 = vadd.f32 %v694_v39, %v662_v38 }
 0x1ac   : > { %v708_v6 = vpop.f32.mrf.mxu1 }
 0x1ad   : > { %v1291_v46 = vmul.f32 0.70710677, %v1288_v40  ;;  %v1293_v11 = vadd.f32 %v708_v6, %v662_v38 }
 0x1af   : > { %v729_v44 = vand.u32 2147483647, %v1291_v46  ;;  %v1297_v41 = vmul.f32 0.70710677, %v1293_v11 }
 0x1b1   : > { %v733_v42 = vmul.f32 0.3275911, %v729_v44  ;;  %v1300_v43 = vand.u32 2147483647, %v1297_v41  ;;  %v837_v3 = vsub.f32 0.0, %v729_v44 }
 0x1b2   : > { %v696_v48 = vpop.f32.mrf.mxu0 }
 0x1b3   : > { %v737_v49 = vadd.f32 1.0, %v733_v42  ;;  %v734_v50 = vmul.f32 0.3275911, %v1300_v43  ;;  %v1303_v13 = vadd.f32 %v696_v48, %v667_v47  ;;  %v841_v18 = vmul.f32 %v837_v3, %v729_v44 }
 0x1b4   : > { %v710_v51 = vpop.f32.mrf.mxu1  ;;  %v838_v23 = vsub.f32 0.0, %v1300_v43 }
 0x1b5   : > { %1079 = vrcp.f32 %v737_v49  ;;  %v738_v52 = vadd.f32 1.0, %v734_v50  ;;  %v1306_v53 = vmul.f32 0.70710677, %v1303_v13  ;;  %v1308_v54 = vadd.f32 %v710_v51, %v667_v47 }
 0x1b6   : > { %v752_v2 = vand.u32 2147483648, %v737_v49  ;;  %v750_v5 = vand.u32 2147483647, %v737_v49  ;;  %vm746_vm10 = vweird.f32 %v737_v49  ;;  %v845_v16 = vmul.f32 1.442695, %v841_v18 }
 0x1b7   : > { %1081 = vrcp.f32 %v738_v52  ;;  %v1311_v55 = vand.u32 2147483647, %v1306_v53  ;;  %v1314_v45 = vmul.f32 0.70710677, %v1308_v54  ;;  %v767_v9 = vand.u32 2147483648, %v738_v52 }
 0x1b8   : > { %v753_v10 = vor.u32 1.1754944e-38, %v752_v2  ;;  %v765_v14 = vand.u32 2147483647, %v738_v52  ;;  %vm751_vm13 = vcmp.eq.f32.partialorder %v750_v5, 8.507059e+37  ;;  %vm761_vm15 = vweird.f32 %v738_v52 }
 0x1b9   : > { %v735_v56 = vmul.f32 0.3275911, %v1311_v55  ;;  %v1318_v58 = vand.u32 2147483647, %v1314_v45  ;;  %v768_v25 = vor.u32 1.1754944e-38, %v767_v9  ;;  %v842_v35 = vmul.f32 %v838_v23, %v1300_v43 }
 0x1ba   : > { %vm766_vm1 = vcmp.eq.f32.partialorder %v765_v14, 8.507059e+37 }
 0x1bb   : > { %v1080_v57 = vpop.eup %1079  ;;  %v1320_v60 = vadd.f32 1.0, %v735_v56  ;;  %v736_v61 = vmul.f32 0.3275911, %v1318_v58 }
 0x1bc   : > { %v742_v59 = vmul.f32 %v1080_v57, %v737_v49  ;;  %vm747_vm9 = vweird.f32 %v1080_v57  ;;  %v839_v49 = vsub.f32 0.0, %v1311_v55 }
 0x1bd   : > { %v1082_v62 = vpop.eup %1081  ;;  %1083 = vrcp.f32 %v1320_v60  ;;  %v1324_v1 = vadd.f32 1.0, %v736_v61  ;;  %vm748_vm11 = vmor %vm746_vm10, %vm747_vm9  ;;  %v782_v27 = vand.u32 2147483648, %v1320_v60  ;;  %v780_v33 = vand.u32 2147483647, %v1320_v60 }
 0x1be   : > { %v743_v63 = vsub.f32 1.0, %v742_v59  ;;  %v757_v0 = vmul.f32 %v1082_v62, %v738_v52  ;;  %vm762_vm12 = vweird.f32 %v1082_v62  ;;  %vm776_vm4 = vweird.f32 %v1320_v60 }
 0x1bf   : > { %1085 = vrcp.f32 %v1324_v1  ;;  %vm763_vm0 = vmor %vm761_vm15, %vm762_vm12  ;;  %v783_v39 = vor.u32 1.1754944e-38, %v782_v27  ;;  %v797_v6 = vand.u32 2147483648, %v1324_v1  ;;  %v795_v48 = vand.u32 2147483647, %v1324_v1 }
 0x1c0   : > { %v744_v4 = vmul.f32 %v1080_v57, %v743_v63  ;;  %v758_v7 = vsub.f32 1.0, %v757_v0  ;;  %vm781_vm7 = vcmp.eq.f32.partialorder %v780_v33, 8.507059e+37  ;;  %vm791_vm8 = vweird.f32 %v1324_v1 }
 0x1c1   : > { %v798_v59 = vor.u32 1.1754944e-38, %v797_v6  ;;  %v847_v61 = vmul.f32 1.442695, %v842_v35  ;;  %vm796_vm10 = vcmp.eq.f32.partialorder %v795_v48, 8.507059e+37  ;;  %v840_v0 = vsub.f32 0.0, %v1318_v58 }
 0x1c2   : > { %v745_v8 = vadd.f32 %v1080_v57, %v744_v4  ;;  %v759_v12 = vmul.f32 %v1082_v62, %v758_v7  ;;  %1087 = vpow2.f32 %v845_v16  ;;  %v843_v5 = vmul.f32 %v839_v49, %v1311_v55 }
 0x1c3   : > { %v1084_v17 = vpop.eup %1083  ;;  %1089 = vpow2.f32 %v847_v61  ;;  %v844_v14 = vmul.f32 %v840_v0, %v1318_v58  ;;  %vm722_vm12 = vcmp.ge.f32.partialorder %v1297_v41, 0.0  ;;  %vm724_vm15 = vcmp.ge.f32.partialorder %v1314_v45, 0.0 }
 0x1c4   : > { %v749_v19 = vsel %vm748_vm11, %v1080_v57, %v745_v8  ;;  %v772_v20 = vmul.f32 %v1084_v17, %v1320_v60  ;;  %v760_v22 = vadd.f32 %v1082_v62, %v759_v12  ;;  %vm777_vm2 = vweird.f32 %v1084_v17 }
 0x1c5   : > { %v1328_v21 = vsel %vm751_vm13, %v753_v10, %v749_v19  ;;  %v1086_v26 = vpop.eup %1085  ;;  %vm778_vm5 = vmor %vm776_vm4, %vm777_vm2  ;;  %v849_v19 = vmul.f32 1.442695, %v843_v5  ;;  %vm721_vm11 = vcmp.ge.f32.partialorder %v1291_v46, 0.0  ;;  %vm723_vm13 = vcmp.ge.f32.partialorder %v1306_v53, 0.0 }
 0x1c6   : > { %v801_v24 = vmul.f32 1.0614054, %v1328_v21  ;;  %v773_v15 = vsub.f32 1.0, %v772_v20  ;;  %v764_v28 = vsel %vm763_vm0, %v1082_v62, %v760_v22  ;;  %v787_v29 = vmul.f32 %v1086_v26, %v1324_v1 }
 0x1c7   : > { %v769_v31 = vsel %vm766_vm1, %v768_v25, %v764_v28  ;;  %vm792_vm6 = vweird.f32 %v1086_v26  ;;  %1091 = vpow2.f32 %v849_v19  ;;  %v714_v0 = vmul.f32 0.5, %v1293_v11  ;;  %v915_v11 = vpop.permute.xlu1 %914 }
 0x1c8   : > { %v805_v30 = vadd.f32 -1.4531521, %v801_v24  ;;  %v774_v32 = vmul.f32 %v1084_v17, %v773_v15  ;;  %v802_v34 = vmul.f32 1.0614054, %v769_v31  ;;  %v788_v36 = vsub.f32 1.0, %v787_v29  ;;  %vm793_vm9 = vmor %vm791_vm8, %vm792_vm6  ;;  %v1088_v25 = vpop.eup %1087 }
 0x1c9   : > { %v1090_v29 = vpop.eup %1089  ;;  %v716_v45 = vmul.f32 0.5, %v1308_v54 }
 0x1ca   : > { %v809_v37 = vmul.f32 %v805_v30, %v1328_v21  ;;  %v775_v38 = vadd.f32 %v1084_v17, %v774_v32  ;;  %v806_v44 = vadd.f32 -1.4531521, %v802_v34  ;;  %v789_v47 = vmul.f32 %v1086_v26, %v788_v36 }
 0x1cc   : > { %v813_v42 = vadd.f32 1.4214138, %v809_v37  ;;  %v779_v50 = vsel %vm778_vm5, %v1084_v17, %v775_v38  ;;  %v810_v43 = vmul.f32 %v806_v44, %v769_v31  ;;  %v790_v56 = vadd.f32 %v1086_v26, %v789_v47 }
 0x1cd   : > { %v784_v51 = vsel %vm781_vm7, %v783_v39, %v779_v50  ;;  %v1092_v36 = vpop.eup %1091  ;;  %v1118_v37 = vmov -1.0  }
 0x1ce   : > { %v817_v52 = vmul.f32 %v813_v42, %v1328_v21  ;;  %v803_v57 = vmul.f32 1.0614054, %v784_v51  ;;  %v814_v60 = vadd.f32 1.4214138, %v810_v43  ;;  %v794_v63 = vsel %vm793_vm9, %v1086_v26, %v790_v56 }
 0x1cf   : > { %v799_v3 = vsel %vm796_vm10, %v798_v59, %v794_v63  ;;  %v851_v26 = vmul.f32 1.442695, %v844_v14  ;;  %v725_v38 = vsel %vm721_vm11, 1.0, %v1118_v37  ;;  %v726_v46 = vsel %vm722_vm12, 1.0, %v1118_v37 }
 0x1d0   : > { %v821_v62 = vadd.f32 -0.28449672, %v817_v52  ;;  %v807_v2 = vadd.f32 -1.4531521, %v803_v57  ;;  %v818_v4 = vmul.f32 %v814_v60, %v769_v31  ;;  %v804_v8 = vmul.f32 1.0614054, %v799_v3 }
 0x1d1   : > { %1093 = vpow2.f32 %v851_v26  ;;  %v727_v49 = vsel %vm723_vm13, 1.0, %v1118_v37  ;;  %v713_v56 = vmul.f32 0.5, %v1288_v40  ;;  %v715_v57 = vmul.f32 0.5, %v1303_v13  ;;  %v873_v40 = vld [vmem:[%s1377_s7] sm:$0xf] }
 0x1d2   : > { %v825_v7 = vmul.f32 %v821_v62, %v1328_v21  ;;  %v811_v1 = vmul.f32 %v807_v2, %v784_v51  ;;  %v822_v9 = vadd.f32 -0.28449672, %v818_v4  ;;  %v808_v12 = vadd.f32 -1.4531521, %v804_v8  ;;  %v917_v8 = vpop.permute.xlu2 %916 }
 0x1d3   : > { %v728_v53 = vsel %vm724_vm15, 1.0, %v1118_v37 }
 0x1d4   : > { %v829_v10 = vadd.f32 0.2548296, %v825_v7  ;;  %v815_v17 = vadd.f32 1.4214138, %v811_v1  ;;  %v826_v18 = vmul.f32 %v822_v9, %v769_v31  ;;  %v812_v22 = vmul.f32 %v808_v12, %v799_v3  ;;  %v880_v7 = vpop.permute.xlu0 %879 }
 0x1d5   : > { %v920_v1 = vsel %vm587_vm3, %v915_v11, %v917_v8 }
 0x1d6   : > { %v833_v20 = vmul.f32 %v829_v10, %v1328_v21  ;;  %v819_v23 = vmul.f32 %v815_v17, %v784_v51  ;;  %v830_v24 = vadd.f32 0.2548296, %v826_v18  ;;  %v816_v55 = vadd.f32 1.4214138, %v812_v22 }
 0x1d7   : > { %v1094_v47 = vpop.eup %1093 }
 0x1d8   : > { %v823_v15 = vadd.f32 -0.28449672, %v819_v23  ;;  %v853_v27 = vmul.f32 %v1088_v25, %v833_v20  ;;  %v834_v28 = vmul.f32 %v830_v24, %v769_v31  ;;  %v820_v16 = vmul.f32 %v816_v55, %v799_v3 }
 0x1da   : > { %v827_v30 = vmul.f32 %v823_v15, %v784_v51  ;;  %v824_v32 = vadd.f32 -0.28449672, %v820_v16  ;;  %v854_v58 = vmul.f32 %v1090_v29, %v834_v28  ;;  %v857_v21 = vsub.f32 1.0, %v853_v27 }
 0x1dc   : > { %v831_v33 = vadd.f32 0.2548296, %v827_v30  ;;  %v828_v34 = vmul.f32 %v824_v32, %v799_v3  ;;  %v858_v31 = vsub.f32 1.0, %v854_v58  ;;  %v861_v44 = vmul.f32 %v857_v21, %v725_v38  ;;  %v919_v9 = vpop.permute.xlu0 %918 }
 0x1dd   : > { %v921_v17 = vsel %vm587_vm3, %v917_v8, %v919_v9 }
 0x1de   : > { %v835_v35 = vmul.f32 %v831_v33, %v784_v51  ;;  %v832_v39 = vadd.f32 0.2548296, %v828_v34  ;;  %v862_v43 = vmul.f32 %v858_v31, %v726_v46  ;;  %v865_v52 = vadd.f32 1.0, %v861_v44 }
 0x1e0   : > { %v855_v6 = vmul.f32 %v1092_v36, %v835_v35  ;;  %v836_v42 = vmul.f32 %v832_v39, %v799_v3  ;;  %v866_v61 = vadd.f32 1.0, %v862_v43  ;;  %v869_v62 = vmul.f32 %v865_v52, %v713_v56 }
 0x1e2   : > { %v859_v48 = vsub.f32 1.0, %v855_v6  ;;  %v856_v50 = vmul.f32 %v1094_v47, %v836_v42  ;;  %v870_v4 = vmul.f32 %v866_v61, %v714_v0 }
 0x1e4   : > { %v863_v51 = vmul.f32 %v859_v48, %v727_v49  ;;  %v860_v41 = vsub.f32 1.0, %v856_v50 }
 0x1e6   : > { %v867_v59 = vadd.f32 1.0, %v863_v51  ;;  %v864_v60 = vmul.f32 %v860_v41, %v728_v53 }
 0x1e8   : > { %v871_v63 = vmul.f32 %v867_v59, %v715_v57  ;;  %v868_v2 = vadd.f32 1.0, %v864_v60 }
 0x1ea   : > { %v874_v3 = vpack.c.bf16 %v871_v63, %v869_v62  ;;  %v872_v5 = vmul.f32 %v868_v2, %v716_v45 }
 0x1ec   : > { %892 = vmatpush.bf16.msra.mxu2 %v874_v3  ;;  %v875_v13 = vpack.c.bf16 %v872_v5, %v870_v4 }
 0x1ee   : > { %905 = vmatpush.bf16.msra.mxu3 %v875_v13 }
 0x1ef   : > { %997 = vmatmul.msk.bf16.vlgmr.msra.gmra.mxu2 %vm496_vm14, %v873_v40 }
 0x1f1   : > { %998 = vmatmul.msk.bf16.vlgmr.msra.gmra.mxu3 %vm496_vm14, %v873_v40 }
 0x272   : > { %v894_v54 = vpop.f32.mrf.mxu2 }
 0x273   : > { %v895_v10 = vadd.f32 %v894_v54, %v880_v7 }
 0x274   : > { %v907_v14 = vpop.f32.mrf.mxu3 }
 0x275   : > { %v924_v12 = vadd.f32 %v920_v1, %v895_v10  ;;  %v908_v18 = vadd.f32 %v907_v14, %v880_v7 }
 0x277   : > { %926 = vst [vmem:[%s332_s11] sm:$0xff] %v924_v12  ;;  %v925_v19 = vadd.f32 %v921_v17, %v908_v18 }
 0x279   : > { %927 = vst [vmem:[%s332_s11 + $0x8] sm:$0xff] %v925_v19 }
 0x27a   : > { %v896_v20 = vpop.f32.mrf.mxu2 }
 0x27c   : > { %v909_v22 = vpop.f32.mrf.mxu3 }
 0x27d PF: > { %s19_s30 = sadd.s32 1, %s1101_s30  }
 0x27e   : > { %p16_p4 = scmp.ge.s32.totalorder %s19_s30, 4  }
 0x280   :  { %18 = sbr.rel (!%p16_p4) target bundleno = 1 (0x1), region = 86 }

// kernel: att_block_forward.2
= control target key start
LH: loop header
LB: loop body
LE: loop exit
PB: predicated region body
PF: predicated region fallthrough
CT: control target
= control target key end

     0   :  { %s1280_s17 = smov 0   ;;  %s1460_s0 = inlined_call_operand.vmem [shape: f32[2,8,256], index: 0, kind: input, shape index: {}]   ;;  %s1461_s1 = inlined_call_operand.vmem [shape: f32[8,1], index: 1, kind: input, shape index: {}]   ;;  %s1462_s2 = inlined_call_operand.vmem [shape: f32[8,1], index: 2, kind: input, shape index: {}]   ;;  %s1463_s3 = inlined_call_operand.vmem [shape: bf16[256,64], index: 3, kind: input, shape index: {}]   ;;  %s1464_s4 = inlined_call_operand.vmem [shape: bf16[64,256], index: 4, kind: input, shape index: {}]   ;;  %s1465_s5 = inlined_call_operand.vmem [shape: bf16[8,8], index: 5, kind: input, shape index: {}]   ;;  %s1466_s6 = inlined_call_operand.vmem [shape: f32[8,1], index: 6, kind: input, shape index: {}]   ;;  %s1467_s7 = inlined_call_operand.vmem [shape: bf16[64,64], index: 7, kind: input, shape index: {}]   ;;  %s1468_s8 = inlined_call_operand.vmem [shape: f32[1,64], index: 8, kind: input, shape index: {}]   ;;  %s1469_s9 = inlined_call_operand.vmem [shape: bf16[64,64], index: 9, kind: input, shape index: {}]   ;;  %s1470_s10 = inlined_call_operand.vmem [shape: f32[1,64], index: 10, kind: input, shape index: {}]   ;;  %s1471_s11 = inlined_call_operand.vmem [shape: f32[2,8,256], index: 11, kind: output, shape index: {}]  }
   0x1 LB: > { %s997_s18 = sadd.s32 4294967295, %s1215_s17   ;;  %p1001_p0 = scmp.ge.s32.totalorder %s1215_s17, 1  ;;  %s1215_s17 = sphi %s1280_s17, %s21_s17  }
   0x2   : > { %p337_p1 = scmp.lt.s32.totalorder %s1215_s17, 3 }
   0x4   : > { %p338_p2 = pnand %p1001_p0, %p337_p1 }
   0x5   : > { %p377_p3 = scmp.lt.s32.totalorder (!%p338_p2), %s997_s18, 1 }
   0x6   : > { %341 = sbr.rel (%p338_p2) target bundleno = 956 (0x3bc), region = 64 }
   0xb   : > { %v390_v0 = vld [vmem:[%s1461_s1] sm:$0xff]  ;;  %v1151_v1 = vld [vmem:[%s1463_s3 + $0x38] sm:$0xff]  ;;  %v1217_v2 = vmov 0   ;;  %v1150_v4 = vld [vmem:[%s1463_s3 + $0x30] sm:$0xff]  ;;  %v1218_v13 = vmov 8.0   ;;  %s1473_s18 = smov (!%p377_p3, %s997_s18), 1 }
   0xc   : > { %1187 = vset.pattern.permute.xlu0 %v1217_v2  ;;  %v1159_v3 = vld [vmem:[%s1463_s3 + $0x78] sm:$0xff]  ;;  %1188 = vset.pattern.permute.xlu1 %v1217_v2  ;;  %v1158_v5 = vld [vmem:[%s1463_s3 + $0x70] sm:$0xff]  ;;  %v1149_v6 = vld [vmem:[%s1463_s3 + $0x28] sm:$0xff]  ;;  %1191 = vrcp.f32 %v1218_v13  ;;  %s1142_s26 = sshll.u32 %s1473_s18, 4  ;;  %vm637_vm7 = vcmask 1043456   ;;  %vm633_vm8 = vcmask 64512  }
   0xd   : > { %457 = vperm.xlu0 %1187, %v390_v0   ;;  %599 = vmatpush.bf16.msra.mxu0 %v1151_v1  ;;  %v391_v7 = vld [vmem:[%s1462_s2] sm:$0xff]  ;;  %v1157_v8 = vld [vmem:[%s1463_s3 + $0x68] sm:$0xff]  ;;  %v1147_v11 = vld [vmem:[%s1463_s3 + $0x18] sm:$0xff]  ;;  %s381_s29 = scalar_lea.vmem %s1460_s0, %s1142_s26  ;;  %vm731_vm14 = vcmask 523264   ;;  %s386_s19 = scalar_lea.vmem %s1471_s11, %s1142_s26 }
   0xe   : > { %612 = vmatpush.bf16.msra.mxu1 %v1159_v3  ;;  %v1148_v9 = vld [vmem:[%s1463_s3 + $0x20] sm:$0xff]  ;;  %v1155_v12 = vld [vmem:[%s1463_s3 + $0x58] sm:$0xff]  ;;  %v389_v18 = vld [vmem:[%s381_s29 + $0x8] sm:$0xff] }
   0xf   : > { %v1156_v10 = vld [vmem:[%s1463_s3 + $0x60] sm:$0xff]  ;;  %v398_v20 = vrot.slane %v389_v18, 4  ;;  %v1146_v56 = vld [vmem:[%s1463_s3 + $0x10] sm:$0xff]  ;;  %v1145_v58 = vld [vmem:[%s1463_s3 + $0x8] sm:$0xff] }
  0x10   : > { %v388_v17 = vld [vmem:[%s381_s29] sm:$0xff]  ;;  %v1154_v57 = vld [vmem:[%s1463_s3 + $0x50] sm:$0xff]  ;;  %v1153_v59 = vld [vmem:[%s1463_s3 + $0x48] sm:$0xff] }
  0x11   : > { %600 = vmatpush.bf16.msra.mxu0 %v1150_v4  ;;  %v392_v19 = vrot.slane %v388_v17, 4  ;;  %v399_v23 = vadd.f32 %v398_v20, %v389_v18  ;;  %v1144_v61 = vld [vmem:[%s1463_s3] sm:$0xff] }
  0x12   : > { %613 = vmatpush.bf16.msra.mxu1 %v1158_v5  ;;  %v1192_v14 = vpop.eup %1191  ;;  %v1152_v62 = vld [vmem:[%s1463_s3 + $0x40] sm:$0xff] }
  0x13   : > { %v405_v15 = vmul.f32 8.0, %v1192_v14  ;;  %v393_v22 = vadd.f32 %v392_v19, %v388_v17  ;;  %v400_v25 = vrot.slane %v399_v23, 2  ;;  %vm409_vm0 = vweird.f32 %v1192_v14 }
  0x15   : > { %464 = vperm.xlu0 %1187, %v391_v7   ;;  %601 = vmatpush.bf16.msra.mxu0 %v1149_v6  ;;  %v406_v16 = vsub.f32 1.0, %v405_v15  ;;  %v394_v24 = vrot.slane %v393_v22, 2  ;;  %v401_v28 = vadd.f32 %v400_v25, %v399_v23 }
  0x16   : > { %614 = vmatpush.bf16.msra.mxu1 %v1157_v8 }
  0x17   : > { %v407_v21 = vmul.f32 %v1192_v14, %v406_v16  ;;  %v395_v27 = vadd.f32 %v394_v24, %v393_v22  ;;  %v402_v30 = vrot.slane %v401_v28, 1  ;;  %v627_v22 = vld [vmem:[%s1466_s6] sm:$0xff] }
  0x18   : > { %630 = vperm.xlu1 %1188, %v627_v22   ;;  %v1166_v22 = vld [vmem:[%s1469_s9 + $0x10] sm:$0xff] }
  0x19   : > { %602 = vmatpush.bf16.msra.mxu0 %v1148_v9  ;;  %v408_v26 = vadd.f32 %v1192_v14, %v407_v21  ;;  %v396_v29 = vrot.slane %v395_v27, 1  ;;  %v403_v33 = vadd.f32 %v402_v30, %v401_v28  ;;  %v625_v28 = vld [vmem:[%s1465_s5] sm:$0xf] }
  0x1a   : > { %615 = vmatpush.bf16.msra.mxu1 %v1156_v10 }
  0x1b   : > { %v410_v31 = vsel %vm409_vm0, %v1192_v14, %v408_v26  ;;  %v397_v32 = vadd.f32 %v396_v29, %v395_v27 }
  0x1c   : > { %v412_v35 = vmul.f32 %v410_v31, %v403_v33 }
  0x1d   : > { %603 = vmatpush.bf16.msra.mxu0 %v1147_v11  ;;  %v411_v34 = vmul.f32 %v410_v31, %v397_v32 }
  0x1e   : > { %616 = vmatpush.bf16.msra.mxu1 %v1155_v12  ;;  %v414_v37 = vsub.f32 %v389_v18, %v412_v35 }
  0x1f   : > { %v413_v36 = vsub.f32 %v388_v17, %v411_v34 }
  0x20   : > { %v416_v39 = vmul.f32 %v414_v37, %v414_v37 }
  0x21   : > { %v415_v38 = vmul.f32 %v413_v36, %v413_v36  ;;  %604 = vmatpush.bf16.msra.mxu0 %v1146_v56 }
  0x22   : > { %v423_v41 = vrot.slane %v416_v39, 4  ;;  %617 = vmatpush.bf16.msra.mxu1 %v1154_v57 }
  0x23   : > { %v417_v40 = vrot.slane %v415_v38, 4 }
  0x24   : > { %v424_v43 = vadd.f32 %v423_v41, %v416_v39  ;;  %v1163_v39 = vld [vmem:[%s1467_s7 + $0x18] sm:$0xff] }
  0x25   : > { %v418_v42 = vadd.f32 %v417_v40, %v415_v38  ;;  %605 = vmatpush.bf16.msra.mxu0 %v1145_v58  ;;  %739 = vmatpush.bf16.msra.mxu3 %v1163_v39  ;;  %v1162_v40 = vld [vmem:[%s1467_s7 + $0x10] sm:$0xff] }
  0x26   : > { %v425_v45 = vrot.slane %v424_v43, 2  ;;  %618 = vmatpush.bf16.msra.mxu1 %v1153_v59 }
  0x27   : > { %v419_v44 = vrot.slane %v418_v42, 2 }
  0x28   : > { %v426_v47 = vadd.f32 %v425_v45, %v424_v43  ;;  %v1161_v43 = vld [vmem:[%s1467_s7 + $0x8] sm:$0xff]  ;;  %v1160_v45 = vld [vmem:[%s1467_s7] sm:$0xff] }
  0x29   : > { %v420_v46 = vadd.f32 %v419_v44, %v418_v42  ;;  %606 = vmatpush.bf16.msra.mxu0 %v1144_v61  ;;  %740 = vmatpush.bf16.msra.mxu3 %v1162_v40 }
  0x2a   : > { %v427_v49 = vrot.slane %v426_v47, 1  ;;  %619 = vmatpush.bf16.msra.mxu1 %v1152_v62 }
  0x2b   : > { %v421_v48 = vrot.slane %v420_v46, 1 }
  0x2c   : > { %v428_v51 = vadd.f32 %v427_v49, %v426_v47 }
  0x2d   : > { %v422_v50 = vadd.f32 %v421_v48, %v420_v46  ;;  %741 = vmatpush.bf16.msra.mxu3 %v1161_v43 }
  0x2e   : > { %v430_v53 = vmul.f32 %v428_v51, %v410_v31 }
  0x2f   : > { %v429_v52 = vmul.f32 %v422_v50, %v410_v31 }
  0x30   : > { %v432_v55 = vadd.f32 1e-06, %v430_v53 }
  0x31   : > { %v431_v54 = vadd.f32 1e-06, %v429_v52  ;;  %742 = vmatpush.bf16.msra.mxu3 %v1160_v45 }
  0x32   : > { %vm449_vm3 = vweird.f32 %v432_v55 }
  0x33   : > { %1193 = vrsqrt.f32 %v431_v54  ;;  %vm439_vm1 = vweird.f32 %v431_v54 }
  0x34   : > { %1195 = vrsqrt.f32 %v432_v55 }
  0x39   : > { %v1194_v60 = vpop.eup %1193 }
  0x3a   : > { %v1196_v63 = vpop.eup %1195  ;;  %v434_v0 = vmul.f32 %v1194_v60, %v431_v54  ;;  %vm440_vm2 = vweird.f32 %v1194_v60 }
  0x3b   : > { %v444_v1 = vmul.f32 %v1196_v63, %v432_v55  ;;  %vm450_vm4 = vweird.f32 %v1196_v63  ;;  %vm441_vm5 = vmor %vm439_vm1, %vm440_vm2 }
  0x3c   : > { %v435_v2 = vmul.f32 %v1194_v60, %v434_v0  ;;  %vm451_vm6 = vmor %vm449_vm3, %vm450_vm4 }
  0x3d   : > { %v445_v3 = vmul.f32 %v1196_v63, %v444_v1 }
  0x3e   : > { %v436_v4 = vmul.f32 0.5, %v435_v2 }
  0x3f   : > { %v446_v5 = vmul.f32 0.5, %v445_v3 }
  0x40   : > { %v437_v6 = vsub.f32 1.5, %v436_v4  ;;  %v1219_v4 = vmov -1.0  }
  0x41   : > { %v447_v7 = vsub.f32 1.5, %v446_v5 }
  0x42   : > { %v438_v8 = vmul.f32 %v1194_v60, %v437_v6 }
  0x43   : > { %v448_v9 = vmul.f32 %v1196_v63, %v447_v7 }
  0x44   : > { %v442_v11 = vsel %vm441_vm5, %v1194_v60, %v438_v8 }
  0x45   : > { %v452_v12 = vsel %vm451_vm6, %v1196_v63, %v448_v9  ;;  %v453_v13 = vmul.f32 %v442_v11, %v413_v36  ;;  %v1189_v11 = vld [vmem:[%s1468_s8] ss:$0 sm:$0xff] }
  0x46   : > { %v454_v14 = vmul.f32 %v452_v12, %v414_v37 }
  0x7f   : > { %v458_v10 = vpop.permute.xlu0 %457 }
  0x80   : > { %v460_v15 = vmul.f32 %v458_v10, %v453_v13  ;;  %v461_v16 = vmul.f32 %v458_v10, %v454_v14 }
  0x87   : > { %v465_v17 = vpop.permute.xlu0 %464 }
  0x88   : > { %v1354_v18 = vadd.f32 %v465_v17, %v460_v15  ;;  %v1356_v19 = vadd.f32 %v465_v17, %v461_v16 }
  0x8a   : > { %v501_v20 = vpack.c.bf16 %v1354_v18, %v1354_v18  ;;  %v502_v21 = vpack.c.bf16 %v1356_v19, %v1356_v19  ;;  %v631_v31 = vpop.permute.xlu1 %630 }
  0x8c   : > { %607 = vmatmul.bf16.vlgmr.msra.gmra.mxu0 %v501_v20  ;;  %620 = vmatmul.bf16.vlgmr.msra.gmra.mxu1 %v502_v21  ;;  %v1167_v21 = vld [vmem:[%s1469_s9 + $0x18] sm:$0xff] }
 0x109   : > { %v608_v23 = vpop.f32.mrf.mxu0  ;;  %v621_v24 = vpop.f32.mrf.mxu1 }
 0x10a   : > { %v622_v25 = vadd.f32 %v621_v24, %v608_v23 }
 0x10c   : > { %v626_v26 = vpack.c.bf16 %v622_v25, %v622_v25  ;;  %v1165_v25 = vld [vmem:[%s1469_s9 + $0x8] sm:$0xff] }
 0x10e   : > { %v639_v27 = vsel %vm637_vm7, %v626_v26, 0 }
 0x10f   : > { %648 = vmatpush.bf16.msra.mxu2 %v639_v27 }
 0x111   : > { %v610_v29 = vpop.f32.mrf.mxu0  ;;  %v623_v30 = vpop.f32.mrf.mxu1 }
 0x112   : > { %1070 = vmatmul.msk.bf16.vlgmr.msra.gmra.mxu2 %vm633_vm8, %v625_v28  ;;  %v1164_v30 = vld [vmem:[%s1469_s9] sm:$0xff] }
 0x113   : > { %832 = vmatpush.bf16.msrb.mxu2 %v1167_v21 }
 0x117   : > { %833 = vmatpush.bf16.msrb.mxu2 %v1166_v22 }
 0x11b   : > { %834 = vmatpush.bf16.msrb.mxu2 %v1165_v25 }
 0x11f   : > { %835 = vmatpush.bf16.msrb.mxu2 %v1164_v30 }
 0x195   : > { %v650_v32 = vpop.f32.mrf.mxu2 }
 0x196   : > { %v651_v33 = vadd.f32 %v650_v32, %v631_v31 }
 0x198   : > { %v655_v34 = vmul.f32 0.70710677, %v651_v33  ;;  %v654_v7 = vmul.f32 0.5, %v651_v33 }
 0x19a   : > { %v658_v35 = vand.u32 2147483647, %v655_v34  ;;  %vm656_vm13 = vcmp.ge.f32.partialorder %v655_v34, 0.0 }
 0x19b   : > { %v657_v5 = vsel %vm656_vm13, 1.0, %v1219_v4 }
 0x19c   : > { %v659_v36 = vmul.f32 0.3275911, %v658_v35  ;;  %v685_v53 = vsub.f32 0.0, %v658_v35 }
 0x19d   : > { %v652_v37 = vpop.f32.mrf.mxu2 }
 0x19e   : > { %v660_v38 = vadd.f32 1.0, %v659_v36  ;;  %v686_v56 = vmul.f32 %v685_v53, %v658_v35 }
 0x1a0   : > { %1197 = vrcp.f32 %v660_v38  ;;  %v672_v46 = vand.u32 2147483648, %v660_v38  ;;  %v670_v48 = vand.u32 2147483647, %v660_v38  ;;  %vm666_vm10 = vweird.f32 %v660_v38 }
 0x1a1   : > { %v687_v59 = vmul.f32 1.442695, %v686_v56  ;;  %v1132_v56 = vld [vmem:[%s1464_s4 + $0x30] sm:$0xf] }
 0x1a2   : > { %v673_v50 = vor.u32 1.1754944e-38, %v672_v46  ;;  %vm671_vm12 = vcmp.eq.f32.partialorder %v670_v48, 8.507059e+37 }
 0x1a3   : > { %1199 = vpow2.f32 %v687_v59 }
 0x1a6   : > { %v1198_v41 = vpop.eup %1197 }
 0x1a7   : > { %v662_v42 = vmul.f32 %v1198_v41, %v660_v38  ;;  %vm667_vm9 = vweird.f32 %v1198_v41 }
 0x1a8   : > { %vm668_vm11 = vmor %vm666_vm10, %vm667_vm9 }
 0x1a9   : > { %v663_v44 = vsub.f32 1.0, %v662_v42  ;;  %v1200_v1 = vpop.eup %1199 }
 0x1ab   : > { %v664_v47 = vmul.f32 %v1198_v41, %v663_v44 }
 0x1ad   : > { %v665_v49 = vadd.f32 %v1198_v41, %v664_v47 }
 0x1af   : > { %v669_v51 = vsel %vm668_vm11, %v1198_v41, %v665_v49 }
 0x1b0   : > { %v674_v52 = vsel %vm671_vm12, %v673_v50, %v669_v51 }
 0x1b1   : > { %v676_v54 = vmul.f32 1.0614054, %v674_v52 }
 0x1b3   : > { %v677_v55 = vadd.f32 -1.4531521, %v676_v54 }
 0x1b5   : > { %v678_v57 = vmul.f32 %v677_v55, %v674_v52 }
 0x1b7   : > { %v679_v58 = vadd.f32 1.4214138, %v678_v57  ;;  %v1175_v57 = vld [vmem:[%s1464_s4 + $0x34] sm:$0xf0] }
 0x1b8   : > { %v1133_v59 = vor.u32 %v1175_v57, %v1132_v56 }
 0x1b9   : > { %v680_v60 = vmul.f32 %v679_v58, %v674_v52  ;;  %v1174_v58 = vld [vmem:[%s1464_s4 + $0x34] sm:$0xf] }
 0x1ba   : > { %916 = vmatpush.bf16.msrb.mxu3 %v1133_v59 }
 0x1bb   : > { %v681_v61 = vadd.f32 -0.28449672, %v680_v60  ;;  %v1134_v60 = vld [vmem:[%s1464_s4 + $0x38] sm:$0xf0] }
 0x1bd   : > { %v682_v62 = vmul.f32 %v681_v61, %v674_v52  ;;  %v1137_v61 = vor.u32 %v1174_v58, %v1134_v60 }
 0x1bf   : > { %v683_v63 = vadd.f32 0.2548296, %v682_v62  ;;  %929 = vmatpush.bf16.msra.mxu2 %v1137_v61  ;;  %v1124_v62 = vld [vmem:[%s1464_s4 + $0x20] sm:$0xf] }
 0x1c1   : > { %v684_v0 = vmul.f32 %v683_v63, %v674_v52  ;;  %v1173_v63 = vld [vmem:[%s1464_s4 + $0x24] sm:$0xf0] }
 0x1c3   : > { %v689_v2 = vmul.f32 %v1200_v1, %v684_v0  ;;  %v1172_v0 = vld [vmem:[%s1464_s4 + $0x24] sm:$0xf]  ;;  %v1125_v1 = vor.u32 %v1173_v63, %v1124_v62 }
 0x1c5   : > { %v690_v3 = vsub.f32 1.0, %v689_v2  ;;  %v1126_v2 = vld [vmem:[%s1464_s4 + $0x28] sm:$0xf0]  ;;  %917 = vmatpush.bf16.msrb.mxu3 %v1125_v1 }
 0x1c7   : > { %v691_v6 = vmul.f32 %v690_v3, %v657_v5  ;;  %v1129_v3 = vor.u32 %v1172_v0, %v1126_v2  ;;  %v1171_v5 = vld [vmem:[%s1464_s4 + $0x14] sm:$0xf0] }
 0x1c9   : > { %v692_v8 = vadd.f32 1.0, %v691_v6  ;;  %v1170_v6 = vld [vmem:[%s1464_s4 + $0x14] sm:$0xf]  ;;  %930 = vmatpush.bf16.msra.mxu2 %v1129_v3 }
 0x1cb   : > { %v693_v9 = vmul.f32 %v692_v8, %v654_v7  ;;  %v1118_v8 = vld [vmem:[%s1464_s4 + $0x18] sm:$0xf0] }
 0x1cd   : > { %v702_v10 = vpack.c.bf16 %v693_v9, %v693_v9  ;;  %v1108_v9 = vld [vmem:[%s1464_s4] sm:$0xf] }
 0x1cf   : > { %1087 = vmatmul.msk.bf16.vlgmr.msra.gmra.mxu3 %vm731_vm14, %v702_v10  ;;  %v1169_v10 = vld [vmem:[%s1464_s4 + $0x4] sm:$0xf0] }
 0x252   : > { %v744_v12 = vpop.f32.mrf.mxu3 }
 0x253   : > { %v745_v13 = vadd.f32 %v1189_v11, %v744_v12  ;;  %v1121_v11 = vor.u32 %v1170_v6, %v1118_v8  ;;  %v1168_v12 = vld [vmem:[%s1464_s4 + $0x4] sm:$0xf] }
 0x255   : > { %v749_v14 = vmul.f32 0.70710677, %v745_v13  ;;  %v748_v52 = vmul.f32 0.5, %v745_v13  ;;  %v1110_v13 = vld [vmem:[%s1464_s4 + $0x8] sm:$0xf0]  ;;  %931 = vmatpush.bf16.msra.mxu2 %v1121_v11 }
 0x257   : > { %v752_v15 = vand.u32 2147483647, %v749_v14  ;;  %vm750_vm3 = vcmp.ge.f32.partialorder %v749_v14, 0.0  ;;  %v1109_v14 = vor.u32 %v1169_v10, %v1108_v9 }
 0x258   : > { %v751_v50 = vsel %vm750_vm3, 1.0, %v1219_v4  ;;  %v1116_v4 = vld [vmem:[%s1464_s4 + $0x10] sm:$0xf] }
 0x259   : > { %v753_v16 = vmul.f32 0.3275911, %v752_v15  ;;  %v779_v35 = vsub.f32 0.0, %v752_v15  ;;  %v1117_v7 = vor.u32 %v1171_v5, %v1116_v4 }
 0x25a   : > { %v746_v17 = vpop.f32.mrf.mxu3 }
 0x25b   : > { %v754_v20 = vadd.f32 1.0, %v753_v16  ;;  %v780_v38 = vmul.f32 %v779_v35, %v752_v15  ;;  %918 = vmatpush.bf16.msrb.mxu3 %v1117_v7  ;;  %v1113_v15 = vor.u32 %v1168_v12, %v1110_v13  ;;  %v1190_v16 = vld [vmem:[%s1470_s10] ss:$0 sm:$0xff] }
 0x25d   : > { %1201 = vrcp.f32 %v754_v20  ;;  %v766_v27 = vand.u32 2147483648, %v754_v20  ;;  %v764_v29 = vand.u32 2147483647, %v754_v20  ;;  %vm760_vm0 = vweird.f32 %v754_v20  ;;  %932 = vmatpush.bf16.msra.mxu2 %v1113_v15 }
 0x25e   : > { %v781_v41 = vmul.f32 1.442695, %v780_v38 }
 0x25f   : > { %v767_v32 = vor.u32 1.1754944e-38, %v766_v27  ;;  %vm765_vm2 = vcmp.eq.f32.partialorder %v764_v29, 8.507059e+37  ;;  %919 = vmatpush.bf16.msrb.mxu3 %v1109_v14 }
 0x260   : > { %1203 = vpow2.f32 %v781_v41 }
 0x263   : > { %v1202_v23 = vpop.eup %1201 }
 0x264   : > { %v756_v24 = vmul.f32 %v1202_v23, %v754_v20  ;;  %vm761_vm15 = vweird.f32 %v1202_v23 }
 0x265   : > { %vm762_vm1 = vmor %vm760_vm0, %vm761_vm15 }
 0x266   : > { %v757_v26 = vsub.f32 1.0, %v756_v24  ;;  %v1204_v47 = vpop.eup %1203 }
 0x268   : > { %v758_v28 = vmul.f32 %v1202_v23, %v757_v26 }
 0x26a   : > { %v759_v31 = vadd.f32 %v1202_v23, %v758_v28 }
 0x26c   : > { %v763_v33 = vsel %vm762_vm1, %v1202_v23, %v759_v31 }
 0x26d   : > { %v768_v34 = vsel %vm765_vm2, %v767_v32, %v763_v33 }
 0x26e   : > { %v770_v36 = vmul.f32 1.0614054, %v768_v34 }
 0x270   : > { %v771_v37 = vadd.f32 -1.4531521, %v770_v36 }
 0x272   : > { %v772_v39 = vmul.f32 %v771_v37, %v768_v34 }
 0x274   : > { %v773_v40 = vadd.f32 1.4214138, %v772_v39 }
 0x276   : > { %v774_v42 = vmul.f32 %v773_v40, %v768_v34 }
 0x278   : > { %v775_v43 = vadd.f32 -0.28449672, %v774_v42 }
 0x27a   : > { %v776_v44 = vmul.f32 %v775_v43, %v768_v34 }
 0x27c   : > { %v777_v45 = vadd.f32 0.2548296, %v776_v44 }
 0x27e   : > { %v778_v46 = vmul.f32 %v777_v45, %v768_v34 }
 0x280   : > { %v783_v48 = vmul.f32 %v1204_v47, %v778_v46 }
 0x282   : > { %v784_v49 = vsub.f32 1.0, %v783_v48 }
 0x284   : > { %v785_v51 = vmul.f32 %v784_v49, %v751_v50 }
 0x286   : > { %v786_v53 = vadd.f32 1.0, %v785_v51 }
 0x288   : > { %v787_v54 = vmul.f32 %v786_v53, %v748_v52 }
 0x28a   : > { %v796_v55 = vpack.c.bf16 %v787_v54, %v787_v54 }
 0x28c   : > { %1104 = vmatmul.msk.bf16.vlgmr.msrb.gmra.mxu2 %vm731_vm14, %v796_v55 }
 0x30f   : > { %v837_v17 = vpop.f32.mrf.mxu2 }
 0x310   : > { %v838_v20 = vadd.f32 %v1190_v16, %v837_v17 }
 0x312   : > { %v1105_v21 = vmul.f32 -1.442695, %v838_v20 }
 0x314   : > { %1205 = vpow2.f32 %v1105_v21 }
 0x317   : > { %v839_v22 = vpop.f32.mrf.mxu2 }
 0x31a   : > { %v1206_v23 = vpop.eup %1205 }
 0x31b   : > { %v844_v24 = vadd.f32 1.0, %v1206_v23 }
 0x31d   : > { %1207 = vrcp.f32 %v844_v24  ;;  %v856_v28 = vand.u32 2147483648, %v844_v24  ;;  %v854_v30 = vand.u32 2147483647, %v844_v24  ;;  %vm850_vm5 = vweird.f32 %v844_v24 }
 0x31f   : > { %v857_v32 = vor.u32 1.1754944e-38, %v856_v28  ;;  %vm855_vm7 = vcmp.eq.f32.partialorder %v854_v30, 8.507059e+37 }
 0x323   : > { %v1208_v25 = vpop.eup %1207 }
 0x324   : > { %v846_v26 = vmul.f32 %v1208_v25, %v844_v24  ;;  %vm851_vm4 = vweird.f32 %v1208_v25 }
 0x325   : > { %vm852_vm6 = vmor %vm850_vm5, %vm851_vm4 }
 0x326   : > { %v847_v27 = vsub.f32 1.0, %v846_v26 }
 0x328   : > { %v848_v29 = vmul.f32 %v1208_v25, %v847_v27 }
 0x32a   : > { %v849_v31 = vadd.f32 %v1208_v25, %v848_v29 }
 0x32c   : > { %v853_v33 = vsel %vm852_vm6, %v1208_v25, %v849_v31 }
 0x32d   : > { %v858_v34 = vsel %vm855_vm7, %v857_v32, %v853_v33 }
 0x32e   : > { %v868_v35 = vpack.c.bf16 %v858_v34, %v858_v34 }
 0x330   : > { %1138 = vmatmul.msk.bf16.vlgmr.msrb.gmra.mxu3 %vm731_vm14, %v868_v35  ;;  %1139 = vmatmul.msk.bf16.vlgmr.msra.gmra.mxu2 %vm731_vm14, %v868_v35 }
 0x3b3   : > { %v921_v36 = vpop.f32.mrf.mxu3  ;;  %v934_v37 = vpop.f32.mrf.mxu2 }
 0x3b4   : > { %v938_v38 = vmul.f32 %v921_v36, %v1354_v18  ;;  %v939_v39 = vmul.f32 %v934_v37, %v1356_v19 }
 0x3b6   : > { %940 = vst [vmem:[%s386_s19] sm:$0xff] %v938_v38 }
 0x3b7   : > { %941 = vst [vmem:[%s386_s19 + $0x8] sm:$0xff] %v939_v39 }
 0x3bb   : > { %v923_v40 = vpop.f32.mrf.mxu3  ;;  %v936_v41 = vpop.f32.mrf.mxu2 }
 0x3bc PF: > { %s21_s17 = sadd.s32 1, %s1215_s17  }
 0x3bd   : > { %p18_p4 = scmp.ge.s32.totalorder %s21_s17, 4  }
 0x3bf   :  { %20 = sbr.rel (!%p18_p4) target bundleno = 1 (0x1), region = 94 }

</bundles_post_ra>
